<compile_context>
chip_gen: v5e
topology: v5e:2x2
jax: 0.10.0
libtpu: 0.0.40
codegen_flags: <defaults>
</compile_context>

<pallas_src>
import math
from functools import partial

import numpy as np
import jax
import jax.numpy as jnp
from jax.experimental import pallas as pl
from jax.experimental.pallas import tpu as pltpu

EMBED_DIM = 32                        # E
NUM_HEADS = 4                         # H
HEAD_DIM = EMBED_DIM // NUM_HEADS     # DH = 8
NUM_PAIRS = NUM_HEADS * NUM_HEADS     # 16 (h1, h2) pairs
REP = NUM_PAIRS * HEAD_DIM            # 128 expanded (pair x head-dim) lanes
PACK = 4                              # tokens per 128-lane row (PACK*E == 128)
DROPOUT_P = 0.1
INV_SQRT_DH = 1.0 / math.sqrt(HEAD_DIM)
MASK_VALUE = -1e30                    # finite -> no NaN even if all heads masked


def _cdiv(a, b):
    return -(-a // b)


def _round_up(a, m):
    return _cdiv(a, m) * m


def _pair_matrices():
    """Constant 0/1 matrices implementing the head-pair expansion/reduction."""
    H, DH, E = NUM_HEADS, HEAD_DIM, EMBED_DIM
    Pq = np.zeros((E, REP), np.float32)          # repeat q head h1 over all h2
    Pk = np.zeros((E, REP), np.float32)          # tile full k/v over all h1
    R = np.zeros((REP, NUM_PAIRS), np.float32)   # sum over DH per (h1,h2) pair
    Pp = np.zeros((NUM_PAIRS, REP), np.float32)  # broadcast pair prob over DH
    S = np.zeros((REP, E), np.float32)           # sum over h2 per (h1, d)
    for h1 in range(H):
        for h2 in range(H):
            p = h1 * H + h2
            for d in range(DH):
                r = p * DH + d
                Pq[h1 * DH + d, r] = 1.0
                Pk[h2 * DH + d, r] = 1.0
                R[r, p] = 1.0
                Pp[p, r] = 1.0
                S[r, h1 * DH + d] = 1.0
    G = np.kron(np.eye(H, dtype=np.float32), np.ones((H, H), np.float32))
    return Pq, Pk, R, Pp, S, G


def mha_kernel(xq_ref, xk_ref, xv_ref, drop_ref,
               wq_ref, wk_ref, wv_ref, bq_ref, bk_ref, bv_ref,
               r_ref, g_ref, pp_ref, wo_ref, bo_ref, mask_ref,
               o_ref):
    # All MXU operands are bf16; accumulation and elementwise math stay f32.
    q_rep = jnp.dot(xq_ref[...], wq_ref[...],
                    preferred_element_type=jnp.float32) + bq_ref[...]
    k_rep = jnp.dot(xk_ref[...], wk_ref[...],
                    preferred_element_type=jnp.float32) + bk_ref[...]

    # Per-token head-vs-head scores, (tr, PACK*16).  1/sqrt(DH) is folded into
    # the Q projection; R sums the DH lanes of each (h1,h2) pair.
    s = jnp.dot((q_rep * k_rep).astype(jnp.bfloat16), r_ref[...],
                preferred_element_type=jnp.float32)
    s = s + mask_ref[...]            # additive 0 / -1e30 mask (broadcast over h2)

    # Row-wise max is a valid softmax shift: within each (token, h1) group the
    # subtracted constant is the same, so the per-group softmax is exact.
    m = jnp.max(s, axis=-1, keepdims=True)
    e = jnp.exp(s - m)
    denom = jnp.dot(e.astype(jnp.bfloat16), g_ref[...],
                    preferred_element_type=jnp.float32)
    p = e * pl.reciprocal(denom, approx=True)     # softmax (EUP reciprocal)
    p = p * drop_ref[...]                         # 0/1 keep mask (1/(1-p) in pp)

    # V projection issued after softmax to shrink live f32 intermediates.
    v_rep = jnp.dot(xv_ref[...], wv_ref[...],
                    preferred_element_type=jnp.float32) + bv_ref[...]
    pv = jnp.dot(p.astype(jnp.bfloat16), pp_ref[...],
                 preferred_element_type=jnp.float32) * v_rep
    y = jnp.dot(pv.astype(jnp.bfloat16), wo_ref[...],
                preferred_element_type=jnp.float32) + bo_ref[...]
    o_ref[...] = y.astype(o_ref.dtype)


def _fold_params(params, key_padding_mask):
    """Fold projections, head-pair expansion, 1/sqrt(DH) and the dropout scale
    into bf16 block-diagonal constants (x @ W^T + b convention)."""
    wq, bq, wk, bk, wv, bv, wo, bo = params
    Pq, Pk, R, Pp, S, G = (jnp.asarray(a) for a in _pair_matrices())
    eye = jnp.eye(PACK, dtype=jnp.float32)
    bf = jnp.bfloat16

    wq_exp = (wq.T @ Pq) * INV_SQRT_DH            # (E, REP), scale folded in
    bq_exp = (bq @ Pq) * INV_SQRT_DH
    wk_exp = wk.T @ Pk
    bk_exp = bk @ Pk
    wv_exp = wv.T @ Pk
    bv_exp = bv @ Pk
    wo_exp = S @ wo.T                             # head-sum folded into Wo

    folded = dict(
        wq=jnp.kron(eye, wq_exp).astype(bf),                       # (128, 512)
        wk=jnp.kron(eye, wk_exp).astype(bf),
        wv=jnp.kron(eye, wv_exp).astype(bf),
        bq=jnp.tile(bq_exp[None, :], (1, PACK)),                   # (1, 512) f32
        bk=jnp.tile(bk_exp[None, :], (1, PACK)),
        bv=jnp.tile(bv_exp[None, :], (1, PACK)),
        r=jnp.kron(eye, R).astype(bf),                             # (512, 64)
        g=jnp.kron(eye, G).astype(bf),                             # (64, 64)
        pp=(jnp.kron(eye, Pp) / (1.0 - DROPOUT_P)).astype(bf),     # (64, 512)
        wo=jnp.kron(eye, wo_exp).astype(bf),                       # (512, 128)
        bo=jnp.tile(bo[None, :], (1, PACK)),                       # (1, 128) f32
    )
    # key_padding_mask (H,) broadcasts over the last (h2) axis of each (H, H)
    # score block, exactly like torch's masked_fill_.
    mask_h2 = jnp.tile(key_padding_mask.reshape(-1).astype(bool), (NUM_HEADS,))
    mask_add = jnp.where(mask_h2, MASK_VALUE, 0.0).astype(jnp.float32)
    folded["mask"] = jnp.tile(mask_add[None, :], (1, PACK))        # (1, 64)
    return folded


@partial(jax.jit, static_argnames=("tile_rows",))
def multi_head_attention(query, key, value, params, key_padding_mask,
                         drop_keep, *, tile_rows=512):
    """query/key/value: (B, L, E); params: PyTorch-layout (out, in) weights;
    key_padding_mask: (H,) 0/1 mask on the last score axis;
    drop_keep: (B*L, H*H) 0/1 dropout keep mask (1/(1-p) folded in-kernel)."""
    B, L, E = query.shape
    assert E == EMBED_DIM
    assert query.shape == key.shape == value.shape, (
        "the module's .view(*mixed_query.shape[:-1], ...) requires q/k/v to "
        "share (B, L)")
    N = B * L

    folded = _fold_params(params, key_padding_mask)

    # Tile / grid selection: big row tiles, rows padded to a tile multiple,
    # >= 2 grid steps when possible so v7x megacore can use both TensorCores.
    rows = _cdiv(N, PACK)
    grid_n = _cdiv(rows, tile_rows)
    if rows >= 16:
        grid_n = max(grid_n, 2)
    tile_r = _round_up(_cdiv(rows, grid_n), 8)
    rows_p = tile_r * grid_n
    n_pad = rows_p * PACK

    def pad_tokens(x2):
        if n_pad != N:
            x2 = jnp.concatenate(
                [x2, jnp.zeros((n_pad - N, x2.shape[-1]), x2.dtype)], axis=0)
        return x2

    # Pack PACK tokens per lane-dense 128-lane row; inputs stream as bf16.
    xq = pad_tokens(query.reshape(N, E)).reshape(rows_p, PACK * E).astype(jnp.bfloat16)
    xk = pad_tokens(key.reshape(N, E)).reshape(rows_p, PACK * E).astype(jnp.bfloat16)
    xv = pad_tokens(value.reshape(N, E)).reshape(rows_p, PACK * E).astype(jnp.bfloat16)
    drop = pad_tokens(drop_keep.astype(jnp.float32)).reshape(
        rows_p, PACK * NUM_PAIRS).astype(jnp.bfloat16)

    def row_spec(cols):
        return pl.BlockSpec((tile_r, cols), lambda i: (i, 0))

    def full_spec(a):
        return pl.BlockSpec(a.shape, lambda i: (0, 0))

    f = folded
    out = pl.pallas_call(
        mha_kernel,
        out_shape=jax.ShapeDtypeStruct((rows_p, PACK * E), jnp.float32),
        grid=(grid_n,),
        in_specs=[row_spec(PACK * E), row_spec(PACK * E), row_spec(PACK * E),
                  row_spec(PACK * NUM_PAIRS),
                  full_spec(f["wq"]), full_spec(f["wk"]), full_spec(f["wv"]),
                  full_spec(f["bq"]), full_spec(f["bk"]), full_spec(f["bv"]),
                  full_spec(f["r"]), full_spec(f["g"]), full_spec(f["pp"]),
                  full_spec(f["wo"]), full_spec(f["bo"]), full_spec(f["mask"])],
        out_specs=row_spec(PACK * E),
        compiler_params=pltpu.CompilerParams(
            dimension_semantics=("parallel",),
            vmem_limit_bytes=32 * 1024 * 1024),
    )(xq, xk, xv, drop,
      f["wq"], f["wk"], f["wv"], f["bq"], f["bk"], f["bv"],
      f["r"], f["g"], f["pp"], f["wo"], f["bo"], f["mask"])

    return out.reshape(n_pad, E)[:N].reshape(B, L, E)


def reference(query, key, value, params, key_padding_mask, drop_keep):
    wq, bq, wk, bk, wv, bv, wo, bo = params
    B, L, E = query.shape
    q = (query @ wq.T + bq).reshape(B, L, NUM_HEADS, HEAD_DIM)
    k = (key @ wk.T + bk).reshape(B, L, NUM_HEADS, HEAD_DIM)
    v = (value @ wv.T + bv).reshape(B, L, NUM_HEADS, HEAD_DIM)
    s = jnp.einsum('blhd,blgd->blhg', q, k) / math.sqrt(HEAD_DIM)
    s = jnp.where(key_padding_mask.astype(bool)[None, None, None, :],
                  -jnp.inf, s)
    p = jax.nn.softmax(s, axis=-1)
    p = p * (drop_keep.astype(jnp.float32) / (1.0 - DROPOUT_P)).reshape(
        B, L, NUM_HEADS, NUM_HEADS)
    ctx = jnp.einsum('blhg,blgd->blhd', p, v).reshape(B, L, E)
    return ctx @ wo.T + bo


if __name__ == "__main__":
    root = jax.random.PRNGKey(0)
    keys = jax.random.split(root, 12)

    B, L, E = 2, 16, EMBED_DIM
    query = jax.random.normal(keys[0], (B, L, E), jnp.float32)
    key_in = jax.random.normal(keys[1], (B, L, E), jnp.float32)
    value = jax.random.normal(keys[2], (B, L, E), jnp.float32)

    def linear_params(kw, kb, e_in, e_out):
        w = jax.random.normal(kw, (e_out, e_in), jnp.float32) * 0.1
        b = jax.random.normal(kb, (e_out,), jnp.float32) * 0.1
        return w, b

    wq, bq = linear_params(keys[3], keys[4], E, E)
    wk, bk = linear_params(keys[5], keys[6], E, E)
    wv, bv = linear_params(keys[7], keys[8], E, E)
    wo, bo = linear_params(keys[9], keys[10], E, E)
    params = (wq, bq, wk, bk, wv, bv, wo, bo)

    # 1 positions are masked (-inf) on the last (head) axis of the scores.
    key_padding_mask = jnp.array([0, 1, 0, 0], dtype=jnp.int32)

    # TODO(synk): PyTorch's dropout RNG stream cannot be bit-reproduced; a
    # jax.random Bernoulli keep mask gives the same F.dropout(p, training=True)
    # semantics (in-kernel pltpu.prng_* regeneration is possible but would not
    # match this reference).
    drop_keep = jax.random.bernoulli(
        keys[11], 1.0 - DROPOUT_P, (B * L, NUM_PAIRS)).astype(jnp.float32)

    out = multi_head_attention(query, key_in, value, params,
                               key_padding_mask, drop_keep)
    jax.block_until_ready(out)
    assert out.shape == (B, L, E)

    ref = reference(query, key_in, value, params, key_padding_mask, drop_keep)
    max_err = float(jnp.max(jnp.abs(out - ref)))
    assert jnp.allclose(out, ref, atol=3e-2, rtol=3e-2), (
        "max abs err = %f" % max_err)
    print("KERNEL_OK")
</pallas_src>

<mosaic_0001>
module attributes {stable_mosaic.version = 11 : i64} {
  func.func @mha_kernel(%arg0: i32, %arg1: memref<8x128xbf16, #tpu.memory_space<vmem>>, %arg2: memref<8x128xbf16, #tpu.memory_space<vmem>>, %arg3: memref<8x128xbf16, #tpu.memory_space<vmem>>, %arg4: memref<8x64xbf16, #tpu.memory_space<vmem>>, %arg5: memref<128x512xbf16, #tpu.memory_space<vmem>>, %arg6: memref<128x512xbf16, #tpu.memory_space<vmem>>, %arg7: memref<128x512xbf16, #tpu.memory_space<vmem>>, %arg8: memref<1x512xf32, #tpu.memory_space<vmem>>, %arg9: memref<1x512xf32, #tpu.memory_space<vmem>>, %arg10: memref<1x512xf32, #tpu.memory_space<vmem>>, %arg11: memref<512x64xbf16, #tpu.memory_space<vmem>>, %arg12: memref<64x64xbf16, #tpu.memory_space<vmem>>, %arg13: memref<64x512xbf16, #tpu.memory_space<vmem>>, %arg14: memref<512x128xbf16, #tpu.memory_space<vmem>>, %arg15: memref<1x128xf32, #tpu.memory_space<vmem>>, %arg16: memref<1x64xf32, #tpu.memory_space<vmem>>, %arg17: memref<8x128xf32, #tpu.memory_space<vmem>>) attributes {dimension_semantics = [#tpu.dimension_semantics<parallel>], iteration_bounds = array<i64: 1>, scalar_prefetch = 0 : i64, scratch_operands = 0 : i64, tpu.core_type = #tpu.core_type<tc>, window_params = [{transform_indices = @transform_0, window_bounds = array<i64: 8, 128>}, {transform_indices = @transform_1, window_bounds = array<i64: 8, 128>}, {transform_indices = @transform_2, window_bounds = array<i64: 8, 128>}, {transform_indices = @transform_3, window_bounds = array<i64: 8, 64>}, {pipeline_mode = #tpu.pipeline_mode<synchronous>, transform_indices = @transform_4, window_bounds = array<i64: 128, 512>}, {pipeline_mode = #tpu.pipeline_mode<synchronous>, transform_indices = @transform_5, window_bounds = array<i64: 128, 512>}, {pipeline_mode = #tpu.pipeline_mode<synchronous>, transform_indices = @transform_6, window_bounds = array<i64: 128, 512>}, {pipeline_mode = #tpu.pipeline_mode<synchronous>, transform_indices = @transform_7, window_bounds = array<i64: 1, 512>}, {pipeline_mode = #tpu.pipeline_mode<synchronous>, transform_indices = @transform_8, window_bounds = array<i64: 1, 512>}, {pipeline_mode = #tpu.pipeline_mode<synchronous>, transform_indices = @transform_9, window_bounds = array<i64: 1, 512>}, {pipeline_mode = #tpu.pipeline_mode<synchronous>, transform_indices = @transform_10, window_bounds = array<i64: 512, 64>}, {pipeline_mode = #tpu.pipeline_mode<synchronous>, transform_indices = @transform_11, window_bounds = array<i64: 64, 64>}, {pipeline_mode = #tpu.pipeline_mode<synchronous>, transform_indices = @transform_12, window_bounds = array<i64: 64, 512>}, {pipeline_mode = #tpu.pipeline_mode<synchronous>, transform_indices = @transform_13, window_bounds = array<i64: 512, 128>}, {pipeline_mode = #tpu.pipeline_mode<synchronous>, transform_indices = @transform_14, window_bounds = array<i64: 1, 128>}, {pipeline_mode = #tpu.pipeline_mode<synchronous>, transform_indices = @transform_15, window_bounds = array<i64: 1, 64>}, {transform_indices = @transform_16, window_bounds = array<i64: 8, 128>}]} {
    %c0 = arith.constant 0 : index
    %c0_0 = arith.constant 0 : index
    %0 = vector.load %arg1[%c0, %c0_0] : memref<8x128xbf16, #tpu.memory_space<vmem>>, vector<8x128xbf16>
    %c0_1 = arith.constant 0 : index
    %c0_2 = arith.constant 0 : index
    %1 = vector.load %arg5[%c0_1, %c0_2] : memref<128x512xbf16, #tpu.memory_space<vmem>>, vector<128x512xbf16>
    %cst = arith.constant dense<0.000000e+00> : vector<8x512xf32>
    %2 = tpu.matmul %0, %1, %cst {dimension_numbers = #tpu.dot_dimension_numbers<[1], [0], [0], [1], [0, 0, 1, 1], [], []>} : vector<8x128xbf16>, vector<128x512xbf16>, vector<8x512xf32> -> vector<8x512xf32>
    %c0_3 = arith.constant 0 : index
    %c0_4 = arith.constant 0 : index
    %3 = vector.load %arg8[%c0_3, %c0_4] : memref<1x512xf32, #tpu.memory_space<vmem>>, vector<1x512xf32>
    %4 = vector.broadcast %3 : vector<1x512xf32> to vector<8x512xf32>
    %5 = arith.addf %2, %4 : vector<8x512xf32>
    %c0_5 = arith.constant 0 : index
    %c0_6 = arith.constant 0 : index
    %6 = vector.load %arg2[%c0_5, %c0_6] : memref<8x128xbf16, #tpu.memory_space<vmem>>, vector<8x128xbf16>
    %c0_7 = arith.constant 0 : index
    %c0_8 = arith.constant 0 : index
    %7 = vector.load %arg6[%c0_7, %c0_8] : memref<128x512xbf16, #tpu.memory_space<vmem>>, vector<128x512xbf16>
    %cst_9 = arith.constant dense<0.000000e+00> : vector<8x512xf32>
    %8 = tpu.matmul %6, %7, %cst_9 {dimension_numbers = #tpu.dot_dimension_numbers<[1], [0], [0], [1], [0, 0, 1, 1], [], []>} : vector<8x128xbf16>, vector<128x512xbf16>, vector<8x512xf32> -> vector<8x512xf32>
    %c0_10 = arith.constant 0 : index
    %c0_11 = arith.constant 0 : index
    %9 = vector.load %arg9[%c0_10, %c0_11] : memref<1x512xf32, #tpu.memory_space<vmem>>, vector<1x512xf32>
    %10 = vector.broadcast %9 : vector<1x512xf32> to vector<8x512xf32>
    %11 = arith.addf %8, %10 : vector<8x512xf32>
    %12 = arith.mulf %5, %11 : vector<8x512xf32>
    %13 = arith.truncf %12 : vector<8x512xf32> to vector<8x512xbf16>
    %c0_12 = arith.constant 0 : index
    %c0_13 = arith.constant 0 : index
    %14 = vector.load %arg11[%c0_12, %c0_13] : memref<512x64xbf16, #tpu.memory_space<vmem>>, vector<512x64xbf16>
    %cst_14 = arith.constant dense<0.000000e+00> : vector<8x64xf32>
    %15 = tpu.matmul %13, %14, %cst_14 {dimension_numbers = #tpu.dot_dimension_numbers<[1], [0], [0], [1], [0, 0, 1, 1], [], []>} : vector<8x512xbf16>, vector<512x64xbf16>, vector<8x64xf32> -> vector<8x64xf32>
    %c0_15 = arith.constant 0 : index
    %c0_16 = arith.constant 0 : index
    %16 = vector.load %arg16[%c0_15, %c0_16] : memref<1x64xf32, #tpu.memory_space<vmem>>, vector<1x64xf32>
    %17 = vector.broadcast %16 : vector<1x64xf32> to vector<8x64xf32>
    %18 = arith.addf %15, %17 : vector<8x64xf32>
    %cst_17 = arith.constant dense<0xFF800000> : vector<8xf32>
    %19 = vector.multi_reduction <maximumf>, %18, %cst_17 [1] : vector<8x64xf32> to vector<8xf32>
    %20 = vector.shape_cast %19 : vector<8xf32> to vector<8x1xf32>
    %21 = vector.broadcast %20 : vector<8x1xf32> to vector<8x64xf32>
    %22 = arith.subf %18, %21 : vector<8x64xf32>
    %23 = math.exp %22 : vector<8x64xf32>
    %24 = arith.truncf %23 : vector<8x64xf32> to vector<8x64xbf16>
    %c0_18 = arith.constant 0 : index
    %c0_19 = arith.constant 0 : index
    %25 = vector.load %arg12[%c0_18, %c0_19] : memref<64x64xbf16, #tpu.memory_space<vmem>>, vector<64x64xbf16>
    %cst_20 = arith.constant dense<0.000000e+00> : vector<8x64xf32>
    %26 = tpu.matmul %24, %25, %cst_20 {dimension_numbers = #tpu.dot_dimension_numbers<[1], [0], [0], [1], [0, 0, 1, 1], [], []>} : vector<8x64xbf16>, vector<64x64xbf16>, vector<8x64xf32> -> vector<8x64xf32>
    %27 = tpu.reciprocal %26 {approx = true} : vector<8x64xf32> -> vector<8x64xf32>
    %28 = arith.mulf %23, %27 : vector<8x64xf32>
    %c0_21 = arith.constant 0 : index
    %c0_22 = arith.constant 0 : index
    %29 = vector.load %arg4[%c0_21, %c0_22] : memref<8x64xbf16, #tpu.memory_space<vmem>>, vector<8x64xbf16>
    %30 = arith.extf %29 : vector<8x64xbf16> to vector<8x64xf32>
    %31 = arith.mulf %28, %30 : vector<8x64xf32>
    %c0_23 = arith.constant 0 : index
    %c0_24 = arith.constant 0 : index
    %32 = vector.load %arg3[%c0_23, %c0_24] : memref<8x128xbf16, #tpu.memory_space<vmem>>, vector<8x128xbf16>
    %c0_25 = arith.constant 0 : index
    %c0_26 = arith.constant 0 : index
    %33 = vector.load %arg7[%c0_25, %c0_26] : memref<128x512xbf16, #tpu.memory_space<vmem>>, vector<128x512xbf16>
    %cst_27 = arith.constant dense<0.000000e+00> : vector<8x512xf32>
    %34 = tpu.matmul %32, %33, %cst_27 {dimension_numbers = #tpu.dot_dimension_numbers<[1], [0], [0], [1], [0, 0, 1, 1], [], []>} : vector<8x128xbf16>, vector<128x512xbf16>, vector<8x512xf32> -> vector<8x512xf32>
    %c0_28 = arith.constant 0 : index
    %c0_29 = arith.constant 0 : index
    %35 = vector.load %arg10[%c0_28, %c0_29] : memref<1x512xf32, #tpu.memory_space<vmem>>, vector<1x512xf32>
    %36 = vector.broadcast %35 : vector<1x512xf32> to vector<8x512xf32>
    %37 = arith.addf %34, %36 : vector<8x512xf32>
    %38 = arith.truncf %31 : vector<8x64xf32> to vector<8x64xbf16>
    %c0_30 = arith.constant 0 : index
    %c0_31 = arith.constant 0 : index
    %39 = vector.load %arg13[%c0_30, %c0_31] : memref<64x512xbf16, #tpu.memory_space<vmem>>, vector<64x512xbf16>
    %cst_32 = arith.constant dense<0.000000e+00> : vector<8x512xf32>
    %40 = tpu.matmul %38, %39, %cst_32 {dimension_numbers = #tpu.dot_dimension_numbers<[1], [0], [0], [1], [0, 0, 1, 1], [], []>} : vector<8x64xbf16>, vector<64x512xbf16>, vector<8x512xf32> -> vector<8x512xf32>
    %41 = arith.mulf %40, %37 : vector<8x512xf32>
    %42 = arith.truncf %41 : vector<8x512xf32> to vector<8x512xbf16>
    %c0_33 = arith.constant 0 : index
    %c0_34 = arith.constant 0 : index
    %43 = vector.load %arg14[%c0_33, %c0_34] : memref<512x128xbf16, #tpu.memory_space<vmem>>, vector<512x128xbf16>
    %cst_35 = arith.constant dense<0.000000e+00> : vector<8x128xf32>
    %44 = tpu.matmul %42, %43, %cst_35 {dimension_numbers = #tpu.dot_dimension_numbers<[1], [0], [0], [1], [0, 0, 1, 1], [], []>} : vector<8x512xbf16>, vector<512x128xbf16>, vector<8x128xf32> -> vector<8x128xf32>
    %c0_36 = arith.constant 0 : index
    %c0_37 = arith.constant 0 : index
    %45 = vector.load %arg15[%c0_36, %c0_37] : memref<1x128xf32, #tpu.memory_space<vmem>>, vector<1x128xf32>
    %46 = vector.broadcast %45 : vector<1x128xf32> to vector<8x128xf32>
    %47 = arith.addf %44, %46 : vector<8x128xf32>
    %c0_38 = arith.constant 0 : index
    %c0_39 = arith.constant 0 : index
    %48 = vector.load %arg17[%c0_38, %c0_39] : memref<8x128xf32, #tpu.memory_space<vmem>>, vector<8x128xf32>
    tpu.vector_store %arg17[%c0_38, %c0_39], %47 {strides = array<i32>} : memref<8x128xf32, #tpu.memory_space<vmem>>, vector<8x128xf32>,
    return
  }
  func.func @transform_0(%arg0: i32) -> (i32, i32) {
    %c0_i32 = arith.constant 0 : i32
    %c0_i32_0 = arith.constant 0 : i32
    return %arg0, %c0_i32 : i32, i32
  }
  func.func @transform_1(%arg0: i32) -> (i32, i32) {
    %c0_i32 = arith.constant 0 : i32
    %c0_i32_0 = arith.constant 0 : i32
    return %arg0, %c0_i32 : i32, i32
  }
  func.func @transform_2(%arg0: i32) -> (i32, i32) {
    %c0_i32 = arith.constant 0 : i32
    %c0_i32_0 = arith.constant 0 : i32
    return %arg0, %c0_i32 : i32, i32
  }
  func.func @transform_3(%arg0: i32) -> (i32, i32) {
    %c0_i32 = arith.constant 0 : i32
    %c0_i32_0 = arith.constant 0 : i32
    return %arg0, %c0_i32 : i32, i32
  }
  func.func @transform_4(%arg0: i32) -> (i32, i32) {
    %c0_i32 = arith.constant 0 : i32
    %c0_i32_0 = arith.constant 0 : i32
    %c0_i32_1 = arith.constant 0 : i32
    return %c0_i32, %c0_i32_0 : i32, i32
  }
  func.func @transform_5(%arg0: i32) -> (i32, i32) {
    %c0_i32 = arith.constant 0 : i32
    %c0_i32_0 = arith.constant 0 : i32
    %c0_i32_1 = arith.constant 0 : i32
    return %c0_i32, %c0_i32_0 : i32, i32
  }
  func.func @transform_6(%arg0: i32) -> (i32, i32) {
    %c0_i32 = arith.constant 0 : i32
    %c0_i32_0 = arith.constant 0 : i32
    %c0_i32_1 = arith.constant 0 : i32
    return %c0_i32, %c0_i32_0 : i32, i32
  }
  func.func @transform_7(%arg0: i32) -> (i32, i32) {
    %c0_i32 = arith.constant 0 : i32
    %c0_i32_0 = arith.constant 0 : i32
    %c0_i32_1 = arith.constant 0 : i32
    return %c0_i32, %c0_i32_0 : i32, i32
  }
  func.func @transform_8(%arg0: i32) -> (i32, i32) {
    %c0_i32 = arith.constant 0 : i32
    %c0_i32_0 = arith.constant 0 : i32
    %c0_i32_1 = arith.constant 0 : i32
    return %c0_i32, %c0_i32_0 : i32, i32
  }
  func.func @transform_9(%arg0: i32) -> (i32, i32) {
    %c0_i32 = arith.constant 0 : i32
    %c0_i32_0 = arith.constant 0 : i32
    %c0_i32_1 = arith.constant 0 : i32
    return %c0_i32, %c0_i32_0 : i32, i32
  }
  func.func @transform_10(%arg0: i32) -> (i32, i32) {
    %c0_i32 = arith.constant 0 : i32
    %c0_i32_0 = arith.constant 0 : i32
    %c0_i32_1 = arith.constant 0 : i32
    return %c0_i32, %c0_i32_0 : i32, i32
  }
  func.func @transform_11(%arg0: i32) -> (i32, i32) {
    %c0_i32 = arith.constant 0 : i32
    %c0_i32_0 = arith.constant 0 : i32
    %c0_i32_1 = arith.constant 0 : i32
    return %c0_i32, %c0_i32_0 : i32, i32
  }
  func.func @transform_12(%arg0: i32) -> (i32, i32) {
    %c0_i32 = arith.constant 0 : i32
    %c0_i32_0 = arith.constant 0 : i32
    %c0_i32_1 = arith.constant 0 : i32
    return %c0_i32, %c0_i32_0 : i32, i32
  }
  func.func @transform_13(%arg0: i32) -> (i32, i32) {
    %c0_i32 = arith.constant 0 : i32
    %c0_i32_0 = arith.constant 0 : i32
    %c0_i32_1 = arith.constant 0 : i32
    return %c0_i32, %c0_i32_0 : i32, i32
  }
  func.func @transform_14(%arg0: i32) -> (i32, i32) {
    %c0_i32 = arith.constant 0 : i32
    %c0_i32_0 = arith.constant 0 : i32
    %c0_i32_1 = arith.constant 0 : i32
    return %c0_i32, %c0_i32_0 : i32, i32
  }
  func.func @transform_15(%arg0: i32) -> (i32, i32) {
    %c0_i32 = arith.constant 0 : i32
    %c0_i32_0 = arith.constant 0 : i32
    %c0_i32_1 = arith.constant 0 : i32
    return %c0_i32, %c0_i32_0 : i32, i32
  }
  func.func @transform_16(%arg0: i32) -> (i32, i32) {
    %c0_i32 = arith.constant 0 : i32
    %c0_i32_0 = arith.constant 0 : i32
    return %arg0, %c0_i32 : i32, i32
  }
}

</mosaic_0001>

<bundles_post_ra>
// kernel: multi_head_attention.1
= control target key start
LH: loop header
LB: loop body
LE: loop exit
PB: predicated region body
PF: predicated region fallthrough
CT: control target
= control target key end

     0   :  { %vm884_vm0 = vcmask 523264   ;;  %s3594_s4 = inlined_call_operand.vmem [shape: bf16[128,512], index: 4, kind: input, shape index: {}]   ;;  %s3595_s5 = inlined_call_operand.vmem [shape: bf16[128,512], index: 5, kind: input, shape index: {}]   ;;  %s3596_s0 = inlined_call_operand.vmem [shape: bf16[8,128], index: 0, kind: input, shape index: {}]   ;;  %s3597_s10 = inlined_call_operand.vmem [shape: bf16[512,64], index: 10, kind: input, shape index: {}]   ;;  %s3598_s1 = inlined_call_operand.vmem [shape: bf16[8,128], index: 1, kind: input, shape index: {}]   ;;  %s3599_s15 = inlined_call_operand.vmem [shape: f32[1,64], index: 15, kind: input, shape index: {}]   ;;  %s3600_s8 = inlined_call_operand.vmem [shape: f32[1,512], index: 8, kind: input, shape index: {}]   ;;  %s3601_s7 = inlined_call_operand.vmem [shape: f32[1,512], index: 7, kind: input, shape index: {}]   ;;  %s3602_s11 = inlined_call_operand.vmem [shape: bf16[64,64], index: 11, kind: input, shape index: {}]   ;;  %s3603_s6 = inlined_call_operand.vmem [shape: bf16[128,512], index: 6, kind: input, shape index: {}]   ;;  %s3604_s12 = inlined_call_operand.vmem [shape: bf16[64,512], index: 12, kind: input, shape index: {}]   ;;  %s3605_s2 = inlined_call_operand.vmem [shape: bf16[8,128], index: 2, kind: input, shape index: {}]   ;;  %s3606_s13 = inlined_call_operand.vmem [shape: bf16[512,128], index: 13, kind: input, shape index: {}]   ;;  %s3607_s3 = inlined_call_operand.vmem [shape: bf16[8,64], index: 3, kind: input, shape index: {}]   ;;  %s3608_s14 = inlined_call_operand.vmem [shape: f32[1,128], index: 14, kind: input, shape index: {}]   ;;  %s3609_s9 = inlined_call_operand.vmem [shape: f32[1,512], index: 9, kind: input, shape index: {}]   ;;  %s3610_s16 = inlined_call_operand.vmem [shape: f32[8,128], index: 16, kind: output, shape index: {}]  }
   0x1   :  { %3612 = sst [smem:[#allocation2_spill]] %s3594_s4 }
   0x2   :  { %s3613_s23 = sld [smem:[#allocation2_spill]] }
   0x8   :  { %v1791_v0 = vld [vmem:[%s3613_s23 + $0xe0] sm:$0xf]  ;;  %v2432_v1 = vld [vmem:[%s3613_s23 + $0xec] sm:$0xf0]  ;;  %v2430_v2 = vld [vmem:[%s3613_s23 + $0xe4] sm:$0xf] }
   0x9   :  { %v1792_v3 = vor.u32 %v2432_v1, %v1791_v0  ;;  %v1793_v4 = vld [vmem:[%s3613_s23 + $0xf0] sm:$0xf0]  ;;  %v1799_v5 = vld [vmem:[%s3613_s23 + $0xe8] sm:$0xf]  ;;  %v2433_v6 = vld [vmem:[%s3613_s23 + $0xf4] sm:$0xf0] }
   0xa   :  { %v1796_v7 = vor.u32 %v2430_v2, %v1793_v4  ;;  %v1800_v8 = vor.u32 %v2433_v6, %v1799_v5  ;;  %v2431_v9 = vld [vmem:[%s3613_s23 + $0xec] sm:$0xf]  ;;  %v1801_v10 = vld [vmem:[%s3613_s23 + $0xf8] sm:$0xf0]  ;;  %v1775_v11 = vld [vmem:[%s3613_s23 + $0xc0] sm:$0xf] }
   0xb   :  { %257 = vmatpush.bf16.msra.mxu0 %v1792_v3  ;;  %v1804_v12 = vor.u32 %v2431_v9, %v1801_v10  ;;  %v2428_v13 = vld [vmem:[%s3613_s23 + $0xcc] sm:$0xf0]  ;;  %v2426_v14 = vld [vmem:[%s3613_s23 + $0xc4] sm:$0xf]  ;;  %v1777_v15 = vld [vmem:[%s3613_s23 + $0xd0] sm:$0xf0] }
   0xc   :  { %270 = vmatpush.bf16.msra.mxu1 %v1796_v7  ;;  %283 = vmatpush.bf16.msra.mxu2 %v1800_v8  ;;  %v1776_v16 = vor.u32 %v2428_v13, %v1775_v11  ;;  %v1780_v17 = vor.u32 %v2426_v14, %v1777_v15  ;;  %v1783_v18 = vld [vmem:[%s3613_s23 + $0xc8] sm:$0xf]  ;;  %v2429_v19 = vld [vmem:[%s3613_s23 + $0xd4] sm:$0xf0]  ;;  %v2427_v20 = vld [vmem:[%s3613_s23 + $0xcc] sm:$0xf] }
   0xd   :  { %296 = vmatpush.bf16.msra.mxu3 %v1804_v12  ;;  %v1784_v21 = vor.u32 %v2429_v19, %v1783_v18  ;;  %v1785_v22 = vld [vmem:[%s3613_s23 + $0xd8] sm:$0xf0]  ;;  %v1759_v23 = vld [vmem:[%s3613_s23 + $0xa0] sm:$0xf]  ;;  %v2424_v24 = vld [vmem:[%s3613_s23 + $0xac] sm:$0xf0] }
   0xe   :  { %v1788_v25 = vor.u32 %v2427_v20, %v1785_v22  ;;  %v2422_v26 = vld [vmem:[%s3613_s23 + $0xa4] sm:$0xf]  ;;  %v1761_v27 = vld [vmem:[%s3613_s23 + $0xb0] sm:$0xf0]  ;;  %v1767_v28 = vld [vmem:[%s3613_s23 + $0xa8] sm:$0xf]  ;;  %v1760_v29 = vor.u32 %v2424_v24, %v1759_v23 }
   0xf   :  { %258 = vmatpush.bf16.msra.mxu0 %v1776_v16  ;;  %v2425_v30 = vld [vmem:[%s3613_s23 + $0xb4] sm:$0xf0]  ;;  %v2423_v31 = vld [vmem:[%s3613_s23 + $0xac] sm:$0xf]  ;;  %v1769_v32 = vld [vmem:[%s3613_s23 + $0xb8] sm:$0xf0]  ;;  %v1764_v33 = vor.u32 %v2422_v26, %v1761_v27 }
  0x10   :  { %271 = vmatpush.bf16.msra.mxu1 %v1780_v17  ;;  %284 = vmatpush.bf16.msra.mxu2 %v1784_v21  ;;  %v1768_v34 = vor.u32 %v2425_v30, %v1767_v28  ;;  %v1743_v35 = vld [vmem:[%s3613_s23 + $0x80] sm:$0xf]  ;;  %v2420_v36 = vld [vmem:[%s3613_s23 + $0x8c] sm:$0xf0]  ;;  %v2418_v37 = vld [vmem:[%s3613_s23 + $0x84] sm:$0xf]  ;;  %v1772_v38 = vor.u32 %v2423_v31, %v1769_v32 }
  0x11   :  { %297 = vmatpush.bf16.msra.mxu3 %v1788_v25  ;;  %v1745_v39 = vld [vmem:[%s3613_s23 + $0x90] sm:$0xf0]  ;;  %v1751_v40 = vld [vmem:[%s3613_s23 + $0x88] sm:$0xf]  ;;  %v2421_v41 = vld [vmem:[%s3613_s23 + $0x94] sm:$0xf0]  ;;  %v1744_v44 = vor.u32 %v2420_v36, %v1743_v35 }
  0x12   :  { %v2419_v42 = vld [vmem:[%s3613_s23 + $0x8c] sm:$0xf]  ;;  %v1753_v43 = vld [vmem:[%s3613_s23 + $0x98] sm:$0xf0]  ;;  %v1748_v45 = vor.u32 %v2418_v37, %v1745_v39  ;;  %v1752_v46 = vor.u32 %v2421_v41, %v1751_v40  ;;  %v1727_v47 = vld [vmem:[%s3613_s23 + $0x60] sm:$0xf] }
  0x13   :  { %259 = vmatpush.bf16.msra.mxu0 %v1760_v29  ;;  %v2416_v48 = vld [vmem:[%s3613_s23 + $0x6c] sm:$0xf0]  ;;  %v2414_v49 = vld [vmem:[%s3613_s23 + $0x64] sm:$0xf]  ;;  %v1756_v50 = vor.u32 %v2419_v42, %v1753_v43  ;;  %v1729_v51 = vld [vmem:[%s3613_s23 + $0x70] sm:$0xf0] }
  0x14   :  { %272 = vmatpush.bf16.msra.mxu1 %v1764_v33  ;;  %285 = vmatpush.bf16.msra.mxu2 %v1768_v34  ;;  %v1735_v52 = vld [vmem:[%s3613_s23 + $0x68] sm:$0xf]  ;;  %v2417_v53 = vld [vmem:[%s3613_s23 + $0x74] sm:$0xf0]  ;;  %v2415_v54 = vld [vmem:[%s3613_s23 + $0x6c] sm:$0xf]  ;;  %v1728_v56 = vor.u32 %v2416_v48, %v1727_v47  ;;  %v1732_v57 = vor.u32 %v2414_v49, %v1729_v51 }
  0x15   :  { %298 = vmatpush.bf16.msra.mxu3 %v1772_v38  ;;  %v1737_v55 = vld [vmem:[%s3613_s23 + $0x78] sm:$0xf0]  ;;  %v1736_v58 = vor.u32 %v2417_v53, %v1735_v52  ;;  %v1711_v59 = vld [vmem:[%s3613_s23 + $0x40] sm:$0xf]  ;;  %v2412_v60 = vld [vmem:[%s3613_s23 + $0x4c] sm:$0xf0] }
  0x16   :  { %v2410_v61 = vld [vmem:[%s3613_s23 + $0x44] sm:$0xf]  ;;  %v1740_v62 = vor.u32 %v2415_v54, %v1737_v55  ;;  %v1713_v63 = vld [vmem:[%s3613_s23 + $0x50] sm:$0xf0]  ;;  %v1719_v0 = vld [vmem:[%s3613_s23 + $0x48] sm:$0xf]  ;;  %v1712_v4 = vor.u32 %v2412_v60, %v1711_v59 }
  0x17   :  { %260 = vmatpush.bf16.msra.mxu0 %v1744_v44  ;;  %v2413_v1 = vld [vmem:[%s3613_s23 + $0x54] sm:$0xf0]  ;;  %v2411_v2 = vld [vmem:[%s3613_s23 + $0x4c] sm:$0xf]  ;;  %v1721_v3 = vld [vmem:[%s3613_s23 + $0x58] sm:$0xf0]  ;;  %v1716_v5 = vor.u32 %v2410_v61, %v1713_v63 }
  0x18   :  { %273 = vmatpush.bf16.msra.mxu1 %v1748_v45  ;;  %286 = vmatpush.bf16.msra.mxu2 %v1752_v46  ;;  %v1720_v6 = vor.u32 %v2413_v1, %v1719_v0  ;;  %v1695_v7 = vld [vmem:[%s3613_s23 + $0x20] sm:$0xf]  ;;  %v2408_v8 = vld [vmem:[%s3613_s23 + $0x2c] sm:$0xf0]  ;;  %v2406_v9 = vld [vmem:[%s3613_s23 + $0x24] sm:$0xf]  ;;  %v1724_v10 = vor.u32 %v2411_v2, %v1721_v3 }
  0x19   :  { %299 = vmatpush.bf16.msra.mxu3 %v1756_v50  ;;  %v1697_v11 = vld [vmem:[%s3613_s23 + $0x30] sm:$0xf0]  ;;  %v1703_v12 = vld [vmem:[%s3613_s23 + $0x28] sm:$0xf]  ;;  %v2409_v13 = vld [vmem:[%s3613_s23 + $0x34] sm:$0xf0]  ;;  %v1696_v16 = vor.u32 %v2408_v8, %v1695_v7 }
  0x1a   :  { %v2407_v14 = vld [vmem:[%s3613_s23 + $0x2c] sm:$0xf]  ;;  %v1705_v15 = vld [vmem:[%s3613_s23 + $0x38] sm:$0xf0]  ;;  %v1679_v17 = vld [vmem:[%s3613_s23] sm:$0xf]  ;;  %v1700_v19 = vor.u32 %v2406_v9, %v1697_v11  ;;  %v1704_v20 = vor.u32 %v2409_v13, %v1703_v12 }
  0x1b   :  { %261 = vmatpush.bf16.msra.mxu0 %v1728_v56  ;;  %v2404_v18 = vld [vmem:[%s3613_s23 + $0xc] sm:$0xf0]  ;;  %v2402_v21 = vld [vmem:[%s3613_s23 + $0x4] sm:$0xf]  ;;  %v1681_v22 = vld [vmem:[%s3613_s23 + $0x10] sm:$0xf0]  ;;  %v1708_v24 = vor.u32 %v2407_v14, %v1705_v15 }
  0x1c   :  { %274 = vmatpush.bf16.msra.mxu1 %v1732_v57  ;;  %287 = vmatpush.bf16.msra.mxu2 %v1736_v58  ;;  %v1687_v23 = vld [vmem:[%s3613_s23 + $0x8] sm:$0xf]  ;;  %v2405_v25 = vld [vmem:[%s3613_s23 + $0x14] sm:$0xf0]  ;;  %v2403_v26 = vld [vmem:[%s3613_s23 + $0xc] sm:$0xf]  ;;  %v1680_v31 = vor.u32 %v2404_v18, %v1679_v17  ;;  %v1684_v35 = vor.u32 %v2402_v21, %v1681_v22 }
  0x1d   :  { %300 = vmatpush.bf16.msra.mxu3 %v1740_v62  ;;  %v1689_v27 = vld [vmem:[%s3613_s23 + $0x18] sm:$0xf0]  ;;  %v1919_v28 = vld [vmem:[%s3595_s5 + $0xe0] sm:$0xf]  ;;  %v2464_v29 = vld [vmem:[%s3595_s5 + $0xec] sm:$0xf0]  ;;  %v1688_v36 = vor.u32 %v2405_v25, %v1687_v23 }
  0x1e   :  { %v2462_v30 = vld [vmem:[%s3595_s5 + $0xe4] sm:$0xf]  ;;  %v1921_v32 = vld [vmem:[%s3595_s5 + $0xf0] sm:$0xf0]  ;;  %v1927_v33 = vld [vmem:[%s3595_s5 + $0xe8] sm:$0xf]  ;;  %v1692_v39 = vor.u32 %v2403_v26, %v1689_v27  ;;  %v1920_v40 = vor.u32 %v2464_v29, %v1919_v28 }
  0x1f   :  { %262 = vmatpush.bf16.msra.mxu0 %v1712_v4  ;;  %v2465_v34 = vld [vmem:[%s3595_s5 + $0xf4] sm:$0xf0]  ;;  %v2463_v37 = vld [vmem:[%s3595_s5 + $0xec] sm:$0xf]  ;;  %v1929_v38 = vld [vmem:[%s3595_s5 + $0xf8] sm:$0xf0]  ;;  %v1924_v41 = vor.u32 %v2462_v30, %v1921_v32 }
  0x20   :  { %275 = vmatpush.bf16.msra.mxu1 %v1716_v5  ;;  %288 = vmatpush.bf16.msra.mxu2 %v1720_v6  ;;  %v1928_v42 = vor.u32 %v2465_v34, %v1927_v33  ;;  %v1903_v43 = vld [vmem:[%s3595_s5 + $0xc0] sm:$0xf]  ;;  %v2460_v44 = vld [vmem:[%s3595_s5 + $0xcc] sm:$0xf0]  ;;  %v2458_v45 = vld [vmem:[%s3595_s5 + $0xc4] sm:$0xf]  ;;  %v1932_v46 = vor.u32 %v2463_v37, %v1929_v38 }
  0x21   :  { %301 = vmatpush.bf16.msra.mxu3 %v1724_v10  ;;  %v1905_v47 = vld [vmem:[%s3595_s5 + $0xd0] sm:$0xf0]  ;;  %v1911_v48 = vld [vmem:[%s3595_s5 + $0xc8] sm:$0xf]  ;;  %v2461_v49 = vld [vmem:[%s3595_s5 + $0xd4] sm:$0xf0]  ;;  %v1904_v53 = vor.u32 %v2460_v44, %v1903_v43 }
  0x22   :  { %v2459_v50 = vld [vmem:[%s3595_s5 + $0xcc] sm:$0xf]  ;;  %v1913_v51 = vld [vmem:[%s3595_s5 + $0xd8] sm:$0xf0]  ;;  %v54_v52 = vld [vmem:[%s3596_s0] sm:$0xf]  ;;  %v1908_v54 = vor.u32 %v2458_v45, %v1905_v47  ;;  %v1912_v55 = vor.u32 %v2461_v49, %v1911_v48 }
  0x23   :  { %263 = vmatpush.bf16.msra.mxu0 %v1696_v16  ;;  %v1887_v56 = vld [vmem:[%s3595_s5 + $0xa0] sm:$0xf]  ;;  %v2456_v57 = vld [vmem:[%s3595_s5 + $0xac] sm:$0xf0]  ;;  %v2454_v58 = vld [vmem:[%s3595_s5 + $0xa4] sm:$0xf]  ;;  %v1916_v59 = vor.u32 %v2459_v50, %v1913_v51 }
  0x24   :  { %276 = vmatpush.bf16.msra.mxu1 %v1700_v19  ;;  %289 = vmatpush.bf16.msra.mxu2 %v1704_v20  ;;  %v1889_v60 = vld [vmem:[%s3595_s5 + $0xb0] sm:$0xf0]  ;;  %v1895_v61 = vld [vmem:[%s3595_s5 + $0xa8] sm:$0xf]  ;;  %v2457_v62 = vld [vmem:[%s3595_s5 + $0xb4] sm:$0xf0]  ;;  %v1888_v1 = vor.u32 %v2456_v57, %v1887_v56 }
  0x25   :  { %302 = vmatpush.bf16.msra.mxu3 %v1708_v24  ;;  %v2455_v63 = vld [vmem:[%s3595_s5 + $0xac] sm:$0xf]  ;;  %v1897_v0 = vld [vmem:[%s3595_s5 + $0xb8] sm:$0xf0]  ;;  %v1892_v2 = vor.u32 %v2454_v58, %v1889_v60  ;;  %v1896_v3 = vor.u32 %v2457_v62, %v1895_v61  ;;  %v1871_v4 = vld [vmem:[%s3595_s5 + $0x80] sm:$0xf] }
  0x26   :  { %v2452_v5 = vld [vmem:[%s3595_s5 + $0x8c] sm:$0xf0]  ;;  %v2450_v6 = vld [vmem:[%s3595_s5 + $0x84] sm:$0xf]  ;;  %v1900_v7 = vor.u32 %v2455_v63, %v1897_v0  ;;  %v1873_v8 = vld [vmem:[%s3595_s5 + $0x90] sm:$0xf0] }
  0x27   :  { %264 = vmatpush.bf16.msra.mxu0 %v1680_v31  ;;  %v1879_v9 = vld [vmem:[%s3595_s5 + $0x88] sm:$0xf]  ;;  %v2453_v10 = vld [vmem:[%s3595_s5 + $0x94] sm:$0xf0]  ;;  %v2451_v11 = vld [vmem:[%s3595_s5 + $0x8c] sm:$0xf]  ;;  %v1872_v13 = vor.u32 %v2452_v5, %v1871_v4  ;;  %v1876_v14 = vor.u32 %v2450_v6, %v1873_v8 }
  0x28   :  { %277 = vmatpush.bf16.msra.mxu1 %v1684_v35  ;;  %290 = vmatpush.bf16.msra.mxu2 %v1688_v36  ;;  %v1881_v12 = vld [vmem:[%s3595_s5 + $0x98] sm:$0xf0]  ;;  %v1880_v15 = vor.u32 %v2453_v10, %v1879_v9  ;;  %v1855_v16 = vld [vmem:[%s3595_s5 + $0x60] sm:$0xf]  ;;  %v2448_v17 = vld [vmem:[%s3595_s5 + $0x6c] sm:$0xf0] }
  0x29   :  { %303 = vmatpush.bf16.msra.mxu3 %v1692_v39  ;;  %v2446_v18 = vld [vmem:[%s3595_s5 + $0x64] sm:$0xf]  ;;  %v1884_v19 = vor.u32 %v2451_v11, %v1881_v12  ;;  %v1857_v20 = vld [vmem:[%s3595_s5 + $0x70] sm:$0xf0]  ;;  %v1863_v21 = vld [vmem:[%s3595_s5 + $0x68] sm:$0xf]  ;;  %v1856_v25 = vor.u32 %v2448_v17, %v1855_v16 }
  0x2a   :  { %265 = vmatmul.bf16.vlgmr.msra.gmra.mxu0 %v54_v52  ;;  %v2449_v22 = vld [vmem:[%s3595_s5 + $0x74] sm:$0xf0]  ;;  %v2447_v23 = vld [vmem:[%s3595_s5 + $0x6c] sm:$0xf]  ;;  %v1865_v24 = vld [vmem:[%s3595_s5 + $0x78] sm:$0xf0]  ;;  %v1860_v26 = vor.u32 %v2446_v18, %v1857_v20 }
  0x2b   :  { %512 = vmatpush.bf16.msrb.mxu0 %v1920_v40  ;;  %291 = vmatmul.bf16.vlgmr.msra.gmra.mxu2 %v54_v52  ;;  %v1864_v27 = vor.u32 %v2449_v22, %v1863_v21  ;;  %v1839_v28 = vld [vmem:[%s3595_s5 + $0x40] sm:$0xf]  ;;  %v2444_v29 = vld [vmem:[%s3595_s5 + $0x4c] sm:$0xf0]  ;;  %v2442_v30 = vld [vmem:[%s3595_s5 + $0x44] sm:$0xf]  ;;  %v1868_v31 = vor.u32 %v2447_v23, %v1865_v24 }
  0x2c   :  { %525 = vmatpush.bf16.msrb.mxu1 %v1924_v41  ;;  %538 = vmatpush.bf16.msrb.mxu2 %v1928_v42  ;;  %v1841_v32 = vld [vmem:[%s3595_s5 + $0x50] sm:$0xf0]  ;;  %v1847_v33 = vld [vmem:[%s3595_s5 + $0x48] sm:$0xf]  ;;  %v2445_v34 = vld [vmem:[%s3595_s5 + $0x54] sm:$0xf0]  ;;  %v1840_v37 = vor.u32 %v2444_v29, %v1839_v28 }
  0x2d   :  { %551 = vmatpush.bf16.msrb.mxu3 %v1932_v46  ;;  %278 = vmatmul.bf16.vlgmr.msra.gmra.mxu1 %v54_v52  ;;  %v2443_v35 = vld [vmem:[%s3595_s5 + $0x4c] sm:$0xf]  ;;  %v1849_v36 = vld [vmem:[%s3595_s5 + $0x58] sm:$0xf0]  ;;  %v1844_v38 = vor.u32 %v2442_v30, %v1841_v32  ;;  %v1848_v39 = vor.u32 %v2445_v34, %v1847_v33  ;;  %v1823_v40 = vld [vmem:[%s3595_s5 + $0x20] sm:$0xf] }
  0x2e   :  { %304 = vmatmul.bf16.vlgmr.msra.gmra.mxu3 %v54_v52  ;;  %v2440_v41 = vld [vmem:[%s3595_s5 + $0x2c] sm:$0xf0]  ;;  %v2438_v42 = vld [vmem:[%s3595_s5 + $0x24] sm:$0xf]  ;;  %v1852_v43 = vor.u32 %v2443_v35, %v1849_v36  ;;  %v1825_v44 = vld [vmem:[%s3595_s5 + $0x30] sm:$0xf0] }
  0x2f   :  { %513 = vmatpush.bf16.msrb.mxu0 %v1904_v53  ;;  %v1831_v45 = vld [vmem:[%s3595_s5 + $0x28] sm:$0xf]  ;;  %v2441_v46 = vld [vmem:[%s3595_s5 + $0x34] sm:$0xf0]  ;;  %v2439_v47 = vld [vmem:[%s3595_s5 + $0x2c] sm:$0xf]  ;;  %v1824_v49 = vor.u32 %v2440_v41, %v1823_v40  ;;  %v1828_v50 = vor.u32 %v2438_v42, %v1825_v44 }
  0x30   :  { %526 = vmatpush.bf16.msrb.mxu1 %v1908_v54  ;;  %539 = vmatpush.bf16.msrb.mxu2 %v1912_v55  ;;  %v1833_v48 = vld [vmem:[%s3595_s5 + $0x38] sm:$0xf0]  ;;  %v1832_v51 = vor.u32 %v2441_v46, %v1831_v45  ;;  %v1807_v52 = vld [vmem:[%s3595_s5] sm:$0xf]  ;;  %v2436_v53 = vld [vmem:[%s3595_s5 + $0xc] sm:$0xf0] }
  0x31   :  { %552 = vmatpush.bf16.msrb.mxu3 %v1916_v59  ;;  %v2434_v54 = vld [vmem:[%s3595_s5 + $0x4] sm:$0xf]  ;;  %v1836_v55 = vor.u32 %v2439_v47, %v1833_v48  ;;  %v1809_v56 = vld [vmem:[%s3595_s5 + $0x10] sm:$0xf0]  ;;  %v1815_v57 = vld [vmem:[%s3595_s5 + $0x8] sm:$0xf]  ;;  %v1808_v61 = vor.u32 %v2436_v53, %v1807_v52 }
  0x32   :  { %v2437_v58 = vld [vmem:[%s3595_s5 + $0x14] sm:$0xf0]  ;;  %v2435_v59 = vld [vmem:[%s3595_s5 + $0xc] sm:$0xf]  ;;  %v1817_v60 = vld [vmem:[%s3595_s5 + $0x18] sm:$0xf0]  ;;  %v1812_v62 = vor.u32 %v2434_v54, %v1809_v56 }
  0x33   :  { %514 = vmatpush.bf16.msrb.mxu0 %v1888_v1  ;;  %v1816_v63 = vor.u32 %v2437_v58, %v1815_v57  ;;  %v1820_v0 = vor.u32 %v2435_v59, %v1817_v60  ;;  %v2473_v1 = vld [vmem:[%s3597_s10 + $0x38] sm:$0xff]  ;;  %v2472_v4 = vld [vmem:[%s3597_s10 + $0x30] sm:$0xff]  ;;  %v2471_v8 = vld [vmem:[%s3597_s10 + $0x28] sm:$0xff] }
  0x34   :  { %527 = vmatpush.bf16.msrb.mxu1 %v1892_v2  ;;  %540 = vmatpush.bf16.msrb.mxu2 %v1896_v3  ;;  %v2481_v2 = vld [vmem:[%s3597_s10 + $0x78] sm:$0xff]  ;;  %v309_v3 = vld [vmem:[%s3598_s1] sm:$0xf]  ;;  %v2480_v5 = vld [vmem:[%s3597_s10 + $0x70] sm:$0xff] }
  0x35   :  { %553 = vmatpush.bf16.msrb.mxu3 %v1900_v7  ;;  %v2489_v6 = vld [vmem:[%s3597_s10 + $0xb8] sm:$0xff]  ;;  %v2479_v9 = vld [vmem:[%s3597_s10 + $0x68] sm:$0xff]  ;;  %v2488_v10 = vld [vmem:[%s3597_s10 + $0xb0] sm:$0xff] }
  0x36   :  { %v2497_v7 = vld [vmem:[%s3597_s10 + $0xf8] sm:$0xff]  ;;  %v2496_v11 = vld [vmem:[%s3597_s10 + $0xf0] sm:$0xff]  ;;  %v2470_v12 = vld [vmem:[%s3597_s10 + $0x20] sm:$0xff] }
  0x37   :  { %515 = vmatpush.bf16.msrb.mxu0 %v1872_v13  ;;  %v2478_v13 = vld [vmem:[%s3597_s10 + $0x60] sm:$0xff]  ;;  %v2469_v16 = vld [vmem:[%s3597_s10 + $0x18] sm:$0xff]  ;;  %v2468_v20 = vld [vmem:[%s3597_s10 + $0x10] sm:$0xff] }
  0x38   :  { %528 = vmatpush.bf16.msrb.mxu1 %v1876_v14  ;;  %541 = vmatpush.bf16.msrb.mxu2 %v1880_v15  ;;  %v2487_v14 = vld [vmem:[%s3597_s10 + $0xa8] sm:$0xff]  ;;  %v2477_v17 = vld [vmem:[%s3597_s10 + $0x58] sm:$0xff]  ;;  %v2486_v18 = vld [vmem:[%s3597_s10 + $0xa0] sm:$0xff] }
  0x39   :  { %554 = vmatpush.bf16.msrb.mxu3 %v1884_v19  ;;  %v2495_v15 = vld [vmem:[%s3597_s10 + $0xe8] sm:$0xff]  ;;  %v2494_v19 = vld [vmem:[%s3597_s10 + $0xe0] sm:$0xff]  ;;  %v2476_v21 = vld [vmem:[%s3597_s10 + $0x50] sm:$0xff] }
  0x3a   :  { %v2485_v22 = vld [vmem:[%s3597_s10 + $0x98] sm:$0xff]  ;;  %v2467_v24 = vld [vmem:[%s3597_s10 + $0x8] sm:$0xff]  ;;  %v2466_v29 = vld [vmem:[%s3597_s10] sm:$0xff] }
  0x3b   :  { %516 = vmatpush.bf16.msrb.mxu0 %v1856_v25  ;;  %v2493_v23 = vld [vmem:[%s3597_s10 + $0xd8] sm:$0xff]  ;;  %v2475_v25 = vld [vmem:[%s3597_s10 + $0x48] sm:$0xff]  ;;  %v2474_v30 = vld [vmem:[%s3597_s10 + $0x40] sm:$0xff] }
  0x3c   :  { %529 = vmatpush.bf16.msrb.mxu1 %v1860_v26  ;;  %542 = vmatpush.bf16.msrb.mxu2 %v1864_v27  ;;  %v2484_v26 = vld [vmem:[%s3597_s10 + $0x90] sm:$0xff]  ;;  %v2483_v32 = vld [vmem:[%s3597_s10 + $0x88] sm:$0xff]  ;;  %v2482_v36 = vld [vmem:[%s3597_s10 + $0x80] sm:$0xff] }
  0x3d   :  { %555 = vmatpush.bf16.msrb.mxu3 %v1868_v31  ;;  %v2492_v27 = vld [vmem:[%s3597_s10 + $0xd0] sm:$0xff]  ;;  %v2491_v33 = vld [vmem:[%s3597_s10 + $0xc8] sm:$0xff]  ;;  %v342_v42 = vld [vmem:[%s3600_s8] sm:$0xf] }
  0x3e   :  { %v344_v45 = vperm.slane %v342_v42, 0  ;;  %v345_v47 = vperm.slane %v342_v42, 1  ;;  %v346_v57 = vperm.slane %v342_v42, 2  ;;  %v347_v60 = vperm.slane %v342_v42, 3  ;;  %v2532_v42 = vld [vmem:[%s3603_s6 + $0xec] sm:$0xf0] }
  0x3f   :  { %517 = vmatpush.bf16.msrb.mxu0 %v1840_v37  ;;  %v2490_v37 = vld [vmem:[%s3597_s10 + $0xc0] sm:$0xff] }
  0x40   :  { %530 = vmatpush.bf16.msrb.mxu1 %v1844_v38  ;;  %543 = vmatpush.bf16.msrb.mxu2 %v1848_v39 }
  0x41   :  { %556 = vmatpush.bf16.msrb.mxu3 %v1852_v43  ;;  %v87_v43 = vld [vmem:[%s3601_s7] sm:$0xf] }
  0x42   :  { %v89_v44 = vperm.slane %v87_v43, 0  ;;  %v90_v46 = vperm.slane %v87_v43, 1  ;;  %v92_v58 = vperm.slane %v87_v43, 3 }
  0x43   :  { %518 = vmatpush.bf16.msrb.mxu0 %v1824_v49 }
  0x44   :  { %531 = vmatpush.bf16.msrb.mxu1 %v1828_v50  ;;  %544 = vmatpush.bf16.msrb.mxu2 %v1832_v51 }
  0x45   :  { %557 = vmatpush.bf16.msrb.mxu3 %v1836_v55  ;;  %v91_v55 = vperm.slane %v87_v43, 2  ;;  %v2522_v43 = vld [vmem:[%s3603_s6 + $0xa4] sm:$0xf] }
  0x47   :  { %519 = vmatpush.bf16.msrb.mxu0 %v1808_v61 }
  0x48   :  { %532 = vmatpush.bf16.msrb.mxu1 %v1812_v62  ;;  %545 = vmatpush.bf16.msrb.mxu2 %v1816_v63 }
  0x49   :  { %558 = vmatpush.bf16.msrb.mxu3 %v1820_v0 }
  0x4a   :  { %520 = vmatmul.bf16.vlgmr.msrb.gmra.mxu0 %v309_v3 }
  0x4b   :  { %832 = vmatpush.bf16.msra.mxu0 %v2473_v1  ;;  %533 = vmatmul.bf16.vlgmr.msrb.gmra.mxu1 %v309_v3 }
  0x4c   :  { %845 = vmatpush.bf16.msra.mxu1 %v2481_v2  ;;  %546 = vmatmul.bf16.vlgmr.msrb.gmra.mxu2 %v309_v3 }
  0x4d   :  { %559 = vmatmul.bf16.vlgmr.msrb.gmra.mxu3 %v309_v3  ;;  %858 = vmatpush.bf16.msra.mxu2 %v2489_v6 }
  0x4e   :  { %871 = vmatpush.bf16.msra.mxu3 %v2497_v7 }
  0x4f   :  { %833 = vmatpush.bf16.msra.mxu0 %v2472_v4 }
  0x50   :  { %846 = vmatpush.bf16.msra.mxu1 %v2480_v5 }
  0x51   :  { %859 = vmatpush.bf16.msra.mxu2 %v2488_v10 }
  0x52   :  { %872 = vmatpush.bf16.msra.mxu3 %v2496_v11 }
  0x53   :  { %834 = vmatpush.bf16.msra.mxu0 %v2471_v8 }
  0x54   :  { %847 = vmatpush.bf16.msra.mxu1 %v2479_v9 }
  0x55   :  { %860 = vmatpush.bf16.msra.mxu2 %v2487_v14 }
  0x56   :  { %873 = vmatpush.bf16.msra.mxu3 %v2495_v15  ;;  %v2582_v15 = vld [vmem:[%s3599_s15] ss:$0 sm:$0xff] }
  0x57   :  { %835 = vmatpush.bf16.msra.mxu0 %v2470_v12  ;;  %v2501_v12 = vld [vmem:[%s3602_s11 + $0x18] sm:$0xff] }
  0x58   :  { %848 = vmatpush.bf16.msra.mxu1 %v2478_v13 }
  0x59   :  { %861 = vmatpush.bf16.msra.mxu2 %v2486_v18 }
  0x5a   :  { %874 = vmatpush.bf16.msra.mxu3 %v2494_v19 }
  0x5b   :  { %836 = vmatpush.bf16.msra.mxu0 %v2469_v16 }
  0x5c   :  { %849 = vmatpush.bf16.msra.mxu1 %v2477_v17 }
  0x5d   :  { %862 = vmatpush.bf16.msra.mxu2 %v2485_v22 }
  0x5e   :  { %875 = vmatpush.bf16.msra.mxu3 %v2493_v23 }
  0x5f   :  { %837 = vmatpush.bf16.msra.mxu0 %v2468_v20 }
  0x60   :  { %850 = vmatpush.bf16.msra.mxu1 %v2476_v21 }
  0x61   :  { %863 = vmatpush.bf16.msra.mxu2 %v2484_v26 }
  0x62   :  { %876 = vmatpush.bf16.msra.mxu3 %v2492_v27  ;;  %v2500_v27 = vld [vmem:[%s3602_s11 + $0x10] sm:$0xff] }
  0x63   :  { %838 = vmatpush.bf16.msra.mxu0 %v2467_v24 }
  0x64   :  { %851 = vmatpush.bf16.msra.mxu1 %v2475_v25 }
  0x65   :  { %864 = vmatpush.bf16.msra.mxu2 %v2483_v32  ;;  %v2200_v32 = vld [vmem:[%s3603_s6 + $0xe8] sm:$0xf] }
  0x66   :  { %877 = vmatpush.bf16.msra.mxu3 %v2491_v33 }
  0x67   :  { %839 = vmatpush.bf16.msra.mxu0 %v2466_v29  ;;  %v2498_v29 = vld [vmem:[%s3602_s11] sm:$0xff] }
  0x68   :  { %852 = vmatpush.bf16.msra.mxu1 %v2474_v30  ;;  %v2530_v30 = vld [vmem:[%s3603_s6 + $0xe4] sm:$0xf] }
  0x69   :  { %865 = vmatpush.bf16.msra.mxu2 %v2482_v36  ;;  %v2178_v36 = vld [vmem:[%s3603_s6 + $0xd0] sm:$0xf0] }
  0x6a   :  { %878 = vmatpush.bf16.msra.mxu3 %v2490_v37 }
  0x6b   :  { %931 = vmatpush.bf16.msrb.mxu0 %v2501_v12 }
  0x6f   :  { %932 = vmatpush.bf16.msrb.mxu0 %v2500_v27  ;;  %v2515_v27 = vld [vmem:[%s3603_s6 + $0x6c] sm:$0xf] }
  0xa7   :  { %v266_v28 = vpop.f32.mrf.mxu0 }
  0xa8   :  { %v267_v49 = vadd.f32 %v266_v28, %v89_v44  ;;  %v2499_v28 = vld [vmem:[%s3602_s11 + $0x8] sm:$0xff]  ;;  %v2162_v44 = vld [vmem:[%s3603_s6 + $0xb0] sm:$0xf0] }
  0xa9   :  { %933 = vmatpush.bf16.msrb.mxu0 %v2499_v28  ;;  %v2138_v28 = vld [vmem:[%s3603_s6 + $0x78] sm:$0xf0] }
  0xaa   :  { %v279_v31 = vpop.f32.mrf.mxu1 }
  0xab   :  { %v280_v52 = vadd.f32 %v279_v31, %v90_v46  ;;  %v2194_v31 = vld [vmem:[%s3603_s6 + $0xf0] sm:$0xf0] }
  0xac   :  { %v2197_v33 = vor.u32 %v2530_v30, %v2194_v31 }
  0xad   :  { %934 = vmatpush.bf16.msrb.mxu0 %v2498_v29 }
  0xae   :  { %v292_v34 = vpop.f32.mrf.mxu2  ;;  %1161 = vmatpush.bf16.msrb.mxu2 %v2197_v33  ;;  %v2506_v33 = vld [vmem:[%s3603_s6 + $0x24] sm:$0xf] }
  0xaf   :  { %v268_v38 = vpop.f32.mrf.mxu0  ;;  %v293_v63 = vadd.f32 %v292_v34, %v91_v55  ;;  %v2533_v34 = vld [vmem:[%s3603_s6 + $0xf4] sm:$0xf0]  ;;  %v2165_v55 = vor.u32 %v2522_v43, %v2162_v44 }
  0xb0   :  { %v2201_v37 = vor.u32 %v2533_v34, %v2200_v32  ;;  %v2184_v38 = vld [vmem:[%s3603_s6 + $0xc8] sm:$0xf]  ;;  %v2112_v34 = vld [vmem:[%s3603_s6 + $0x40] sm:$0xf] }
  0xb1   :  { %v305_v35 = vpop.f32.mrf.mxu3 }
  0xb2   :  { %v281_v39 = vpop.f32.mrf.mxu1  ;;  %v306_v3 = vadd.f32 %v305_v35, %v92_v58  ;;  %v2526_v35 = vld [vmem:[%s3603_s6 + $0xc4] sm:$0xf]  ;;  %1174 = vmatpush.bf16.msrb.mxu3 %v2201_v37  ;;  %v2186_v58 = vld [vmem:[%s3603_s6 + $0xd8] sm:$0xf0]  ;;  %v2104_v37 = vld [vmem:[%s3603_s6 + $0x28] sm:$0xf] }
  0xb3   :  { %v2529_v39 = vld [vmem:[%s3603_s6 + $0xd4] sm:$0xf0] }
  0xb6   :  { %v294_v40 = vpop.f32.mrf.mxu2 }
  0xb7   :  { %v2192_v40 = vld [vmem:[%s3603_s6 + $0xe0] sm:$0xf] }
  0xb8   :  { %v2193_v46 = vor.u32 %v2532_v42, %v2192_v40  ;;  %v2122_v42 = vld [vmem:[%s3603_s6 + $0x58] sm:$0xf0] }
  0xb9   :  { %v307_v41 = vpop.f32.mrf.mxu3 }
  0xba   :  { %v2181_v41 = vor.u32 %v2526_v35, %v2178_v36  ;;  %1148 = vmatpush.bf16.msrb.mxu1 %v2193_v46  ;;  %v2512_v35 = vld [vmem:[%s3603_s6 + $0x4c] sm:$0xf0] }
  0xbb   :  { %v2113_v43 = vor.u32 %v2512_v35, %v2112_v34  ;;  %v2508_v46 = vld [vmem:[%s3603_s6 + $0x2c] sm:$0xf0]  ;;  %v2224_v34 = vld [vmem:[%s3604_s12 + $0x20] sm:$0xf] }
  0xbc   :  { %1162 = vmatpush.bf16.msrb.mxu2 %v2181_v41  ;;  %v2511_v41 = vld [vmem:[%s3603_s6 + $0x4c] sm:$0xf]  ;;  %v2540_v35 = vld [vmem:[%s3604_s12 + $0x2c] sm:$0xf0] }
  0xc0   :  { %1163 = vmatpush.bf16.msrb.mxu2 %v2165_v55  ;;  %v2106_v55 = vld [vmem:[%s3603_s6 + $0x38] sm:$0xf0] }
  0xc7   :  { %v521_v48 = vpop.f32.mrf.mxu0 }
  0xc8   :  { %v522_v50 = vadd.f32 %v521_v48, %v344_v45  ;;  %v534_v51 = vpop.f32.mrf.mxu1  ;;  %v2185_v45 = vor.u32 %v2529_v39, %v2184_v38  ;;  %v2525_v48 = vld [vmem:[%s3603_s6 + $0xb4] sm:$0xf0]  ;;  %v2141_v39 = vor.u32 %v2515_v27, %v2138_v28  ;;  %v2250_v27 = vld [vmem:[%s3604_s12 + $0x58] sm:$0xf0] }
  0xc9   :  { %v535_v53 = vadd.f32 %v534_v51, %v345_v47  ;;  %v2168_v47 = vld [vmem:[%s3603_s6 + $0xa8] sm:$0xf]  ;;  %v2176_v51 = vld [vmem:[%s3603_s6 + $0xc0] sm:$0xf]  ;;  %v2509_v38 = vld [vmem:[%s3603_s6 + $0x34] sm:$0xf0] }
  0xca   :  { %v564_v54 = vmul.f32 %v522_v50, %v267_v49  ;;  %v2531_v49 = vld [vmem:[%s3603_s6 + $0xec] sm:$0xf]  ;;  %v2202_v50 = vld [vmem:[%s3603_s6 + $0xf8] sm:$0xf0]  ;;  %1175 = vmatpush.bf16.msrb.mxu3 %v2185_v45  ;;  %v2096_v45 = vld [vmem:[%s3603_s6 + $0x20] sm:$0xf] }
  0xcb   :  { %v565_v56 = vmul.f32 %v535_v53, %v280_v52  ;;  %v2528_v52 = vld [vmem:[%s3603_s6 + $0xcc] sm:$0xf0]  ;;  %v2205_v53 = vor.u32 %v2531_v49, %v2202_v50  ;;  %v2082_v49 = vld [vmem:[%s3603_s6 + $0x10] sm:$0xf0]  ;;  %v2125_v50 = vor.u32 %v2511_v41, %v2122_v42  ;;  %v2216_v42 = vld [vmem:[%s3604_s12 + $0x8] sm:$0xf] }
  0xcc   :  { %v568_v59 = vpack.c.bf16 %v564_v54, %v564_v54  ;;  %v2177_v54 = vor.u32 %v2528_v52, %v2176_v51  ;;  %v2088_v51 = vld [vmem:[%s3603_s6 + $0x8] sm:$0xf]  ;;  %v2505_v52 = vld [vmem:[%s3603_s6 + $0x14] sm:$0xf0]  ;;  %v2210_v41 = vld [vmem:[%s3604_s12 + $0x10] sm:$0xf0] }
  0xcd   :  { %v569_v61 = vpack.c.bf16 %v565_v56, %v565_v56  ;;  %v2518_v56 = vld [vmem:[%s3603_s6 + $0x84] sm:$0xf] }
  0xce   :  { %840 = vmatmul.bf16.vlgmr.msra.gmra.mxu0 %v568_v59  ;;  %v2169_v59 = vor.u32 %v2525_v48, %v2168_v47  ;;  %1149 = vmatpush.bf16.msrb.mxu1 %v2177_v54  ;;  %v2105_v47 = vor.u32 %v2509_v38, %v2104_v37  ;;  %v2502_v48 = vld [vmem:[%s3603_s6 + $0x4] sm:$0xf]  ;;  %v2097_v54 = vor.u32 %v2508_v46, %v2096_v45  ;;  %v2539_v37 = vld [vmem:[%s3604_s12 + $0x2c] sm:$0xf]  ;;  %v2234_v38 = vld [vmem:[%s3604_s12 + $0x38] sm:$0xf0] }
  0xcf   :  { %v547_v62 = vpop.f32.mrf.mxu2  ;;  %853 = vmatmul.bf16.vlgmr.msra.gmra.mxu1 %v569_v61  ;;  %v523_v2 = vpop.f32.mrf.mxu0  ;;  %1187 = vmatpush.bf16.msra.mxu0 %v2205_v53  ;;  %v2507_v53 = vld [vmem:[%s3603_s6 + $0x2c] sm:$0xf]  ;;  %v2208_v45 = vld [vmem:[%s3604_s12] sm:$0xf]  ;;  %v2536_v46 = vld [vmem:[%s3604_s12 + $0xc] sm:$0xf0] }
  0xd0   :  { %v548_v0 = vadd.f32 %v547_v62, %v346_v57  ;;  %v560_v1 = vpop.f32.mrf.mxu3  ;;  %v536_v5 = vpop.f32.mrf.mxu1  ;;  %v2527_v57 = vld [vmem:[%s3603_s6 + $0xcc] sm:$0xf]  ;;  %v2160_v62 = vld [vmem:[%s3603_s6 + $0xa0] sm:$0xf]  ;;  %1176 = vmatpush.bf16.msrb.mxu3 %v2169_v59 }
  0xd1   :  { %v561_v4 = vadd.f32 %v560_v1, %v347_v60  ;;  %v2146_v60 = vld [vmem:[%s3603_s6 + $0x90] sm:$0xf0]  ;;  %v2189_v61 = vor.u32 %v2527_v57, %v2186_v58  ;;  %v2521_v1 = vld [vmem:[%s3603_s6 + $0x94] sm:$0xf0]  ;;  %v2085_v58 = vor.u32 %v2502_v48, %v2082_v49  ;;  %v2080_v59 = vld [vmem:[%s3603_s6] sm:$0xf]  ;;  %v2209_v48 = vor.u32 %v2536_v46, %v2208_v45 }
  0xd2   :  { %v566_v6 = vmul.f32 %v548_v0, %v293_v63  ;;  %v2524_v63 = vld [vmem:[%s3603_s6 + $0xac] sm:$0xf0]  ;;  %v2152_v0 = vld [vmem:[%s3603_s6 + $0x88] sm:$0xf]  ;;  %v2149_v5 = vor.u32 %v2518_v56, %v2146_v60  ;;  %v2546_v56 = vld [vmem:[%s3604_s12 + $0x64] sm:$0xf] }
  0xd3   :  { %v567_v7 = vmul.f32 %v561_v4, %v306_v3  ;;  %v2161_v2 = vor.u32 %v2524_v63, %v2160_v62  ;;  %v2523_v3 = vld [vmem:[%s3603_s6 + $0xac] sm:$0xf]  ;;  %v2170_v4 = vld [vmem:[%s3603_s6 + $0xb8] sm:$0xf0]  ;;  %1188 = vmatpush.bf16.msra.mxu0 %v2189_v61  ;;  %v2258_v57 = vld [vmem:[%s3604_s12 + $0x70] sm:$0xf0]  ;;  %v2089_v61 = vor.u32 %v2505_v52, %v2088_v51 }
  0xd4   :  { %v570_v8 = vpack.c.bf16 %v566_v6, %v566_v6  ;;  %v2144_v6 = vld [vmem:[%s3603_s6 + $0x80] sm:$0xf]  ;;  %v2173_v12 = vor.u32 %v2523_v3, %v2170_v4  ;;  %1164 = vmatpush.bf16.msrb.mxu2 %v2149_v5  ;;  %v2504_v60 = vld [vmem:[%s3603_s6 + $0xc] sm:$0xf0]  ;;  %v2264_v3 = vld [vmem:[%s3604_s12 + $0x68] sm:$0xf] }
  0xd5   :  { %v571_v9 = vpack.c.bf16 %v567_v7, %v567_v7  ;;  %v2520_v7 = vld [vmem:[%s3603_s6 + $0x8c] sm:$0xf0]  ;;  %1150 = vmatpush.bf16.msrb.mxu1 %v2161_v2  ;;  %v2256_v62 = vld [vmem:[%s3604_s12 + $0x60] sm:$0xf]  ;;  %v2261_v2 = vor.u32 %v2546_v56, %v2258_v57  ;;  %v2549_v4 = vld [vmem:[%s3604_s12 + $0x74] sm:$0xf0] }
  0xd6   :  { %866 = vmatmul.bf16.vlgmr.msra.gmra.mxu2 %v570_v8  ;;  %v2153_v8 = vor.u32 %v2521_v1, %v2152_v0  ;;  %v2548_v63 = vld [vmem:[%s3604_s12 + $0x6c] sm:$0xf0]  ;;  %v2109_v1 = vor.u32 %v2507_v53, %v2106_v55  ;;  %v2535_v49 = vld [vmem:[%s3604_s12 + $0xc] sm:$0xf]  ;;  %v2557_v52 = vld [vmem:[%s3606_s13 + $0x38] sm:$0xff] }
  0xd7   :  { %879 = vmatmul.bf16.vlgmr.msra.gmra.mxu3 %v571_v9  ;;  %v549_v10 = vpop.f32.mrf.mxu2  ;;  %v2514_v9 = vld [vmem:[%s3603_s6 + $0x64] sm:$0xf]  ;;  %1189 = vmatpush.bf16.msra.mxu0 %v2173_v12  ;;  %v2266_v12 = vld [vmem:[%s3604_s12 + $0x78] sm:$0xf0]  ;;  %v2556_v56 = vld [vmem:[%s3606_s13 + $0x30] sm:$0xff] }
  0xd8   :  { %v562_v11 = vpop.f32.mrf.mxu3  ;;  %v2130_v10 = vld [vmem:[%s3603_s6 + $0x70] sm:$0xf0]  ;;  %1177 = vmatpush.bf16.msrb.mxu3 %v2153_v8  ;;  %v2090_v8 = vld [vmem:[%s3603_s6 + $0x18] sm:$0xf0] }
  0xd9   :  { %v2136_v11 = vld [vmem:[%s3603_s6 + $0x68] sm:$0xf]  ;;  %v2581_v53 = vld [vmem:[%s3606_s13 + $0xf8] sm:$0xff]  ;;  %v2580_v57 = vld [vmem:[%s3606_s13 + $0xf0] sm:$0xff] }
  0xda   :  { %v2573_v55 = vld [vmem:[%s3606_s13 + $0xb8] sm:$0xff] }
 0x14b   :  { %v841_v13 = vpop.f32.mrf.mxu0 }
 0x14c   :  { %v854_v14 = vpop.f32.mrf.mxu1  ;;  %v842_v16 = vadd.f32 %v2582_v15, %v841_v13  ;;  %v2517_v13 = vld [vmem:[%s3603_s6 + $0x74] sm:$0xf0]  ;;  %v2154_v15 = vld [vmem:[%s3603_s6 + $0x98] sm:$0xf0] }
 0x14e   :  { %v855_v19 = vadd.f32 %v854_v14, %v842_v16  ;;  %v2519_v14 = vld [vmem:[%s3603_s6 + $0x8c] sm:$0xf]  ;;  %v2145_v16 = vor.u32 %v2520_v7, %v2144_v6  ;;  %v2081_v6 = vor.u32 %v2504_v60, %v2080_v59  ;;  %v2572_v59 = vld [vmem:[%s3606_s13 + $0xb0] sm:$0xff] }
 0x14f   :  { %v2503_v7 = vld [vmem:[%s3603_s6 + $0xc] sm:$0xf] }
 0x150   :  { %1151 = vmatpush.bf16.msrb.mxu1 %v2145_v16  ;;  %v2542_v16 = vld [vmem:[%s3604_s12 + $0x44] sm:$0xf]  ;;  %v2555_v60 = vld [vmem:[%s3606_s13 + $0x28] sm:$0xff] }
 0x153   :  { %v843_v17 = vpop.f32.mrf.mxu0 }
 0x154   :  { %v856_v18 = vpop.f32.mrf.mxu1  ;;  %v2133_v17 = vor.u32 %v2514_v9, %v2130_v10  ;;  %v945_v9 = vld [vmem:[%s3605_s2] sm:$0xf]  ;;  %v2257_v10 = vor.u32 %v2548_v63, %v2256_v62  ;;  %v2563_v62 = vld [vmem:[%s3606_s13 + $0x68] sm:$0xff] }
 0x155   :  { %v2128_v18 = vld [vmem:[%s3603_s6 + $0x60] sm:$0xf]  ;;  %v2571_v63 = vld [vmem:[%s3606_s13 + $0xa8] sm:$0xff] }
 0x156   :  { %1165 = vmatpush.bf16.msrb.mxu2 %v2133_v17  ;;  %v2242_v17 = vld [vmem:[%s3604_s12 + $0x50] sm:$0xf0] }
 0x159   :  { %v867_v20 = vpop.f32.mrf.mxu2 }
 0x15a   :  { %v868_v21 = vadd.f32 %v867_v20, %v855_v19  ;;  %v880_v22 = vpop.f32.mrf.mxu3  ;;  %v2516_v19 = vld [vmem:[%s3603_s6 + $0x6c] sm:$0xf0]  ;;  %v2137_v20 = vor.u32 %v2517_v13, %v2136_v11  ;;  %v2547_v11 = vld [vmem:[%s3604_s12 + $0x6c] sm:$0xf]  ;;  %v2265_v13 = vor.u32 %v2549_v4, %v2264_v3  ;;  %v2562_v3 = vld [vmem:[%s3606_s13 + $0x60] sm:$0xff] }
 0x15b   :  { %v2129_v30 = vor.u32 %v2516_v19, %v2128_v18  ;;  %v2248_v18 = vld [vmem:[%s3604_s12 + $0x48] sm:$0xf]  ;;  %v2245_v19 = vor.u32 %v2542_v16, %v2242_v17  ;;  %v2570_v4 = vld [vmem:[%s3606_s13 + $0xa0] sm:$0xff] }
 0x15c   :  { %v3171_v23 = vadd.f32 %v880_v22, %v868_v21  ;;  %v2510_v21 = vld [vmem:[%s3603_s6 + $0x44] sm:$0xf]  ;;  %v2114_v22 = vld [vmem:[%s3603_s6 + $0x50] sm:$0xf0]  ;;  %1178 = vmatpush.bf16.msrb.mxu3 %v2137_v20  ;;  %v2545_v20 = vld [vmem:[%s3604_s12 + $0x54] sm:$0xf0] }
 0x15d   :  { %v2117_v32 = vor.u32 %v2510_v21, %v2114_v22  ;;  %1152 = vmatpush.bf16.msrb.mxu1 %v2129_v30  ;;  %v2240_v21 = vld [vmem:[%s3604_s12 + $0x40] sm:$0xf]  ;;  %v2544_v22 = vld [vmem:[%s3604_s12 + $0x4c] sm:$0xf0]  ;;  %v2226_v30 = vld [vmem:[%s3604_s12 + $0x30] sm:$0xf0] }
 0x15e   :  { %v885_v24 = vsel %vm884_vm0, %v3171_v23, -inf }
 0x15f   :  { %886 = vmax.xlane.f32.xlu0 %v885_v24  ;;  %v2120_v24 = vld [vmem:[%s3603_s6 + $0x48] sm:$0xf]  ;;  %1166 = vmatpush.bf16.msrb.mxu2 %v2117_v32 }
 0x161   :  { %v869_v25 = vpop.f32.mrf.mxu2  ;;  %1153 = vmatpush.bf16.msrb.mxu1 %v2113_v43 }
 0x162   :  { %v882_v26 = vpop.f32.mrf.mxu3  ;;  %v2157_v25 = vor.u32 %v2519_v14, %v2154_v15  ;;  %v2093_v14 = vor.u32 %v2503_v7, %v2090_v8  ;;  %v2269_v15 = vor.u32 %v2547_v11, %v2266_v12  ;;  %v2561_v7 = vld [vmem:[%s3606_s13 + $0x58] sm:$0xff]  ;;  %v2576_v11 = vld [vmem:[%s3606_s13 + $0xd0] sm:$0xff]  ;;  %v942_v12 = vld [vmem:[%s3607_s3] sm:$0xf] }
 0x163   :  { %v2513_v26 = vld [vmem:[%s3603_s6 + $0x54] sm:$0xf0]  ;;  %v943_v16 = vunpack.c.l.bf16 %v942_v12 }
 0x164   :  { %v2121_v36 = vor.u32 %v2513_v26, %v2120_v24  ;;  %1190 = vmatpush.bf16.msra.mxu0 %v2157_v25  ;;  %v2249_v24 = vor.u32 %v2545_v20, %v2248_v18  ;;  %v2241_v25 = vor.u32 %v2544_v22, %v2240_v21  ;;  %v2543_v26 = vld [vmem:[%s3604_s12 + $0x4c] sm:$0xf]  ;;  %v2569_v8 = vld [vmem:[%s3606_s13 + $0x98] sm:$0xff] }
 0x165   :  { %1154 = vmatpush.bf16.msrb.mxu1 %v2097_v54  ;;  %v2253_v28 = vor.u32 %v2543_v26, %v2250_v27  ;;  %v2565_v54 = vld [vmem:[%s3606_s13 + $0x78] sm:$0xff] }
 0x166   :  { %1179 = vmatpush.bf16.msrb.mxu3 %v2121_v36 }
 0x168   :  { %1191 = vmatpush.bf16.msra.mxu0 %v2141_v39  ;;  %v2237_v39 = vor.u32 %v2539_v37, %v2234_v38 }
 0x169   :  { %1155 = vmatpush.bf16.msrb.mxu1 %v2081_v6  ;;  %v2577_v6 = vld [vmem:[%s3606_s13 + $0xd8] sm:$0xff] }
 0x16a   :  { %1180 = vmatpush.bf16.msrb.mxu3 %v2105_v47 }
 0x16c   :  { %1192 = vmatpush.bf16.msra.mxu0 %v2125_v50  ;;  %1156 = vmatmul.bf16.vlgmr.msrb.gmra.mxu1 %v945_v9  ;;  %v2218_v50 = vld [vmem:[%s3604_s12 + $0x18] sm:$0xf0] }
 0x16d   :  { %1304 = vmatpush.bf16.msra.mxu1 %v2257_v10  ;;  %v2221_v51 = vor.u32 %v2535_v49, %v2218_v50  ;;  %v2552_v10 = vld [vmem:[%s3606_s13 + $0x10] sm:$0xff] }
 0x16e   :  { %1181 = vmatpush.bf16.msrb.mxu3 %v2089_v61  ;;  %v2579_v61 = vld [vmem:[%s3606_s13 + $0xe8] sm:$0xff] }
 0x170   :  { %1193 = vmatpush.bf16.msra.mxu0 %v2109_v1  ;;  %v2554_v1 = vld [vmem:[%s3606_s13 + $0x20] sm:$0xff] }
 0x171   :  { %1182 = vmatmul.bf16.vlgmr.msrb.gmra.mxu3 %v945_v9  ;;  %1305 = vmatpush.bf16.msra.mxu1 %v2241_v25 }
 0x172   :  { %1330 = vmatpush.bf16.msra.mxu3 %v2265_v13 }
 0x174   :  { %1194 = vmatpush.bf16.msra.mxu0 %v2093_v14  ;;  %v2551_v14 = vld [vmem:[%s3606_s13 + $0x8] sm:$0xff] }
 0x176   :  { %1331 = vmatpush.bf16.msra.mxu3 %v2249_v24 }
 0x1d2   :  { %v887_v29 = vpop.xlane.xlu0 %886 }
 0x1d3   :  { %v888_v31 = vsub.f32 %v3171_v23, %v887_v29  ;;  %v2098_v23 = vld [vmem:[%s3603_s6 + $0x30] sm:$0xf0]  ;;  %v2538_v29 = vld [vmem:[%s3604_s12 + $0x24] sm:$0xf] }
 0x1d4   :  { %v2101_v44 = vor.u32 %v2506_v33, %v2098_v23  ;;  %v2229_v32 = vor.u32 %v2538_v29, %v2226_v30  ;;  %v2541_v33 = vld [vmem:[%s3604_s12 + $0x34] sm:$0xf0]  ;;  %v2225_v23 = vor.u32 %v2540_v35, %v2224_v34  ;;  %v2560_v29 = vld [vmem:[%s3606_s13 + $0x50] sm:$0xff]  ;;  %v2567_v34 = vld [vmem:[%s3606_s13 + $0x88] sm:$0xff] }
 0x1d5   :  { %v889_v40 = vmul.f32 1.442695, %v888_v31  ;;  %v2232_v31 = vld [vmem:[%s3604_s12 + $0x28] sm:$0xf]  ;;  %v2568_v30 = vld [vmem:[%s3606_s13 + $0x90] sm:$0xff]  ;;  %v2558_v35 = vld [vmem:[%s3606_s13 + $0x40] sm:$0xff] }
 0x1d6   :  { %1167 = vmatpush.bf16.msrb.mxu2 %v2101_v44  ;;  %v2233_v36 = vor.u32 %v2541_v33, %v2232_v31  ;;  %1306 = vmatpush.bf16.msra.mxu1 %v2225_v23  ;;  %v2537_v44 = vld [vmem:[%s3604_s12 + $0x14] sm:$0xf0]  ;;  %v2550_v31 = vld [vmem:[%s3606_s13] sm:$0xff]  ;;  %v2559_v33 = vld [vmem:[%s3606_s13 + $0x48] sm:$0xff] }
 0x1d7   :  { %2584 = vpow2.f32 %v889_v40  ;;  %v2534_v40 = vld [vmem:[%s3604_s12 + $0x4] sm:$0xf]  ;;  %v2217_v47 = vor.u32 %v2537_v44, %v2216_v42  ;;  %v978_v23 = vld [vmem:[%s3609_s9] sm:$0xf] }
 0x1d8   :  { %1332 = vmatpush.bf16.msra.mxu3 %v2233_v36  ;;  %v2213_v43 = vor.u32 %v2534_v40, %v2210_v41  ;;  %v2566_v36 = vld [vmem:[%s3606_s13 + $0x80] sm:$0xff]  ;;  %v980_v37 = vperm.slane %v978_v23, 0  ;;  %v983_v38 = vperm.slane %v978_v23, 3  ;;  %v981_v42 = vperm.slane %v978_v23, 1 }
 0x1d9   :  { %v982_v45 = vperm.slane %v978_v23, 2 }
 0x1da   :  { %1168 = vmatpush.bf16.msrb.mxu2 %v2085_v58  ;;  %1307 = vmatpush.bf16.msra.mxu1 %v2209_v48  ;;  %v2564_v58 = vld [vmem:[%s3606_s13 + $0x70] sm:$0xff] }
 0x1dc   :  { %1333 = vmatpush.bf16.msra.mxu3 %v2217_v47 }
 0x1dd   :  { %v3383_v0 = vpop.eup %2584  ;;  %1169 = vmatmul.bf16.vlgmr.msrb.gmra.mxu2 %v945_v9 }
 0x1de   :  { %v891_v5 = vpack.c.bf16 %v3383_v0, %v3383_v0  ;;  %1317 = vmatpush.bf16.msra.mxu2 %v2261_v2  ;;  %1620 = vmatpush.bf16.msrb.mxu1 %v2557_v52  ;;  %v2578_v2 = vld [vmem:[%s3606_s13 + $0xe0] sm:$0xff] }
 0x1e0   :  { %2077 = vmatmul.msk.bf16.vlgmr.msrb.gmra.mxu0 %vm884_vm0, %v891_v5  ;;  %1646 = vmatpush.bf16.msrb.mxu3 %v2573_v55  ;;  %v2553_v5 = vld [vmem:[%s3606_s13 + $0x18] sm:$0xff] }
 0x1e1   :  { %1343 = vmatpush.bf16.msrb.mxu0 %v2269_v15  ;;  %v2575_v15 = vld [vmem:[%s3606_s13 + $0xc8] sm:$0xff] }
 0x1e2   :  { %1318 = vmatpush.bf16.msra.mxu2 %v2245_v19  ;;  %1621 = vmatpush.bf16.msrb.mxu1 %v2556_v56 }
 0x1e4   :  { %1647 = vmatpush.bf16.msrb.mxu3 %v2572_v59 }
 0x1e5   :  { %1344 = vmatpush.bf16.msrb.mxu0 %v2253_v28 }
 0x1e6   :  { %1319 = vmatpush.bf16.msra.mxu2 %v2229_v32  ;;  %1622 = vmatpush.bf16.msrb.mxu1 %v2555_v60  ;;  %v2574_v32 = vld [vmem:[%s3606_s13 + $0xc0] sm:$0xff] }
 0x1e8   :  { %1648 = vmatpush.bf16.msrb.mxu3 %v2571_v63  ;;  %v2583_v63 = vld [vmem:[%s3608_s14] ss:$0 sm:$0xff] }
 0x1e9   :  { %1345 = vmatpush.bf16.msrb.mxu0 %v2237_v39  ;;  %v1157_v13 = vpop.f32.mrf.mxu1 }
 0x1ea   :  { %1320 = vmatpush.bf16.msra.mxu2 %v2213_v43  ;;  %1623 = vmatpush.bf16.msrb.mxu1 %v2554_v1  ;;  %v1158_v39 = vadd.f32 %v1157_v13, %v980_v37 }
 0x1ec   :  { %1649 = vmatpush.bf16.msrb.mxu3 %v2570_v4 }
 0x1ed   :  { %1346 = vmatpush.bf16.msrb.mxu0 %v2221_v51 }
 0x1ee   :  { %1633 = vmatpush.bf16.msrb.mxu2 %v2565_v54  ;;  %1624 = vmatpush.bf16.msrb.mxu1 %v2553_v5 }
 0x1f0   :  { %1195 = vmatmul.bf16.vlgmr.msra.gmra.mxu0 %v945_v9  ;;  %1650 = vmatpush.bf16.msrb.mxu3 %v2569_v8 }
 0x1f1   :  { %1659 = vmatpush.bf16.msra.mxu0 %v2581_v53  ;;  %v1159_v25 = vpop.f32.mrf.mxu1 }
 0x1f2   :  { %1634 = vmatpush.bf16.msrb.mxu2 %v2564_v58  ;;  %1625 = vmatpush.bf16.msrb.mxu1 %v2552_v10 }
 0x1f4   :  { %v1183_v21 = vpop.f32.mrf.mxu3  ;;  %1651 = vmatpush.bf16.msrb.mxu3 %v2568_v30 }
 0x1f5   :  { %1660 = vmatpush.bf16.msra.mxu0 %v2580_v57  ;;  %v1184_v50 = vadd.f32 %v1183_v21, %v982_v45 }
 0x1f6   :  { %1635 = vmatpush.bf16.msrb.mxu2 %v2563_v62  ;;  %1626 = vmatpush.bf16.msrb.mxu1 %v2551_v14 }
 0x1f8   :  { %1652 = vmatpush.bf16.msrb.mxu3 %v2567_v34 }
 0x1f9   :  { %1661 = vmatpush.bf16.msra.mxu0 %v2579_v61 }
 0x1fa   :  { %1636 = vmatpush.bf16.msrb.mxu2 %v2562_v3  ;;  %1627 = vmatpush.bf16.msrb.mxu1 %v2550_v31 }
 0x1fc   :  { %v1185_v28 = vpop.f32.mrf.mxu3  ;;  %1653 = vmatpush.bf16.msrb.mxu3 %v2566_v36 }
 0x1fd   :  { %1662 = vmatpush.bf16.msra.mxu0 %v2578_v2 }
 0x1fe   :  { %1637 = vmatpush.bf16.msrb.mxu2 %v2561_v7 }
 0x201   :  { %1663 = vmatpush.bf16.msra.mxu0 %v2577_v6 }
 0x202   :  { %1638 = vmatpush.bf16.msrb.mxu2 %v2560_v29 }
 0x205   :  { %1664 = vmatpush.bf16.msra.mxu0 %v2576_v11 }
 0x206   :  { %1639 = vmatpush.bf16.msrb.mxu2 %v2559_v33 }
 0x209   :  { %1665 = vmatpush.bf16.msra.mxu0 %v2575_v15 }
 0x20a   :  { %1640 = vmatpush.bf16.msrb.mxu2 %v2558_v35 }
 0x20d   :  { %1666 = vmatpush.bf16.msra.mxu0 %v2574_v32 }
 0x25d   :  { %v936_v9 = vpop.f32.mrf.mxu0 }
 0x25e   :  { %2586 = vrcp.f32 %v936_v9 }
 0x260   :  { %v1170_v20 = vpop.f32.mrf.mxu2 }
 0x261   :  { %v1171_v49 = vadd.f32 %v1170_v20, %v981_v42 }
 0x264   :  { %v2587_v17 = vpop.eup %2586 }
 0x265   :  { %v941_v18 = vmul.f32 %v2587_v17, %v3383_v0  ;;  %v938_v19 = vpop.f32.mrf.mxu0 }
 0x267   :  { %v944_v22 = vmul.f32 %v943_v16, %v941_v18 }
 0x268   :  { %v1172_v27 = vpop.f32.mrf.mxu2 }
 0x269   :  { %v1200_v24 = vpack.c.bf16 %v944_v22, %v944_v22 }
 0x26b   :  { %2270 = vmatmul.msk.bf16.vlgmr.msra.gmra.mxu1 %vm884_vm0, %v1200_v24  ;;  %2271 = vmatmul.msk.bf16.vlgmr.msra.gmra.mxu2 %vm884_vm0, %v1200_v24 }
 0x26c   :  { %2272 = vmatmul.msk.bf16.vlgmr.msra.gmra.mxu3 %vm884_vm0, %v1200_v24  ;;  %2273 = vmatmul.msk.bf16.vlgmr.msrb.gmra.mxu0 %vm884_vm0, %v1200_v24 }
 0x26d   :  { %v1196_v26 = vpop.f32.mrf.mxu0 }
 0x26e   :  { %v1197_v40 = vadd.f32 %v1196_v26, %v983_v38 }
 0x275   :  { %v1198_v0 = vpop.f32.mrf.mxu0 }
 0x2e8   :  { %v1309_v41 = vpop.f32.mrf.mxu1 }
 0x2e9   :  { %v1352_v43 = vmul.f32 %v1309_v41, %v1158_v39  ;;  %v1348_v44 = vpop.f32.mrf.mxu0 }
 0x2ea   :  { %v1355_v46 = vmul.f32 %v1348_v44, %v1197_v40 }
 0x2eb   :  { %v1356_v47 = vpack.c.bf16 %v1352_v43, %v1352_v43 }
 0x2ec   :  { %v1359_v48 = vpack.c.bf16 %v1355_v46, %v1355_v46 }
 0x2ed   :  { %1628 = vmatmul.bf16.vlgmr.msrb.gmra.mxu1 %v1356_v47 }
 0x2ee   :  { %1667 = vmatmul.bf16.vlgmr.msra.gmra.mxu0 %v1359_v48  ;;  %v1322_v51 = vpop.f32.mrf.mxu2 }
 0x2ef   :  { %v1353_v52 = vmul.f32 %v1322_v51, %v1171_v49  ;;  %v1335_v53 = vpop.f32.mrf.mxu3 }
 0x2f0   :  { %v1354_v54 = vmul.f32 %v1335_v53, %v1184_v50  ;;  %v1311_v55 = vpop.f32.mrf.mxu1 }
 0x2f1   :  { %v1357_v56 = vpack.c.bf16 %v1353_v52, %v1353_v52  ;;  %v1350_v57 = vpop.f32.mrf.mxu0 }
 0x2f2   :  { %v1358_v58 = vpack.c.bf16 %v1354_v54, %v1354_v54 }
 0x2f3   :  { %1641 = vmatmul.bf16.vlgmr.msrb.gmra.mxu2 %v1357_v56 }
 0x2f4   :  { %1654 = vmatmul.bf16.vlgmr.msrb.gmra.mxu3 %v1358_v58 }
 0x2f6   :  { %v1324_v59 = vpop.f32.mrf.mxu2 }
 0x2f7   :  { %v1337_v60 = vpop.f32.mrf.mxu3 }
 0x36a   :  { %v1629_v61 = vpop.f32.mrf.mxu1 }
 0x36b   :  { %v1668_v62 = vpop.f32.mrf.mxu0  ;;  %v1630_v3 = vadd.f32 %v2583_v63, %v1629_v61 }
 0x372   :  { %v1631_v1 = vpop.f32.mrf.mxu1 }
 0x373   :  { %v1670_v2 = vpop.f32.mrf.mxu0 }
 0x376   :  { %v1642_v4 = vpop.f32.mrf.mxu2 }
 0x377   :  { %v1643_v5 = vadd.f32 %v1642_v4, %v1630_v3  ;;  %v1655_v6 = vpop.f32.mrf.mxu3 }
 0x379   :  { %v1656_v7 = vadd.f32 %v1655_v6, %v1643_v5 }
 0x37b   :  { %v1669_v8 = vadd.f32 %v1668_v62, %v1656_v7 }
 0x37d   :  { %1672 = vst [vmem:[%s3610_s16] sm:$0xff] %v1669_v8 }
 0x37e   :  { %v1644_v9 = vpop.f32.mrf.mxu2 }
 0x37f   :  { %v1657_v10 = vpop.f32.mrf.mxu3 }

</bundles_post_ra>
